<compile_context>
chip_gen: v6e
topology: v6e:2x2x1
jax: 0.10.0
libtpu: 0.0.40
codegen_flags: <defaults>
</compile_context>

<pallas_src>
import math

import jax
import jax.numpy as jnp
from jax.experimental import pallas as pl
from jax.experimental.pallas import tpu as pltpu

# --- model hyper-parameters (small, consistent with a tiny lm_encoder) ---
BATCH = 2
SEQ = 8
HIDDEN = 32
NUM_HEADS = 4
HEAD_DIM = HIDDEN // NUM_HEADS
FFN = 4 * HIDDEN
VOCAB = 64
LN_EPS = 1e-5

# Packed small-parameter buffer: one bias / LayerNorm vector per row of a
# (8, 128) f32 tile (every slice starts at lane 0 -> no lane rotations).
_PACK_ROWS = 8
_PACK_LANES = 128
(_ROW_B1, _ROW_BO, _ROW_LN1G, _ROW_LN1B,
 _ROW_B2, _ROW_LN2G, _ROW_LN2B) = range(7)
assert FFN <= _PACK_LANES

# Packed matmul-weight buffer (bf16, [192, 128]): w1 | w2 | wo stacked on rows,
# every block at lane offset 0 and a sublane offset that is a multiple of 8.
_W1_R0 = 0
_W2_R0 = _W1_R0 + HIDDEN            # 32
_WO_R0 = _W2_R0 + FFN               # 160
_WBIG_ROWS = _WO_R0 + HIDDEN        # 192


def encoder_kernel(ids_ref, emb_ref, wqkv_h_ref, wbig_ref, pk_ref, o_ref):
    """Embedding gather + one transformer encoder layer, single invocation."""
    BS = BATCH * SEQ
    H = HIDDEN
    NH = NUM_HEADS
    dH = HEAD_DIM
    scale = 1.0 / math.sqrt(dH)
    f32, bf16 = jnp.float32, jnp.bfloat16

    # ---- fused embedding lookup: one-hot(ids) @ emb_aug (exact, on MXU) ----
    # emb_aug has an extra trailing ones column, so x_aug[:, H] == 1.0 and the
    # QKV bias row folded into wqkv_h is picked up by the projection matmul.
    ids = ids_ref[...]                                            # [BS, 1] int32
    vocab_iota = jax.lax.broadcasted_iota(jnp.int32, (BS, VOCAB), 1)
    onehot = (vocab_iota == ids).astype(f32)                      # [BS, VOCAB]
    x_aug = jnp.dot(onehot, emb_ref[...],
                    preferred_element_type=f32)                   # [BS, H+1]
    x = x_aug[:, :H]                                              # f32 residual
    xb_aug = x_aug.astype(bf16)

    # ---- packed small params (each a [1, N] row slice at lane 0) ----
    pk = pk_ref[...]
    b1 = pk[_ROW_B1:_ROW_B1 + 1, :FFN]
    bo = pk[_ROW_BO:_ROW_BO + 1, :H]
    ln1g = pk[_ROW_LN1G:_ROW_LN1G + 1, :H]
    ln1b = pk[_ROW_LN1B:_ROW_LN1B + 1, :H]
    b2 = pk[_ROW_B2:_ROW_B2 + 1, :H]
    ln2g = pk[_ROW_LN2G:_ROW_LN2G + 1, :H]
    ln2b = pk[_ROW_LN2B:_ROW_LN2B + 1, :H]

    # ---- QKV projection, head-major: batched matmul over 3*NH head slabs ----
    # Heads come out on the LEADING axis -> no lane slices / concats later.
    xb_b = jnp.broadcast_to(xb_aug[None, :, :], (3 * NH, BS, H + 1))
    qkv_h = jnp.einsum("nbh,nhd->nbd", xb_b, wqkv_h_ref[...],
                       preferred_element_type=f32)                # [3NH, BS, dH]

    # leading-dim slices + leading/sublane-aligned reshapes only
    q_h = qkv_h[0 * NH:1 * NH].reshape(NH * BATCH, SEQ, dH).astype(bf16)
    k_h = qkv_h[1 * NH:2 * NH].reshape(NH * BATCH, SEQ, dH).astype(bf16)
    v_h = qkv_h[2 * NH:3 * NH].reshape(NH * BATCH, SEQ, dH).astype(bf16)

    # ---- attention, batched over all (head, doc) pairs ----
    s = jnp.einsum("nqd,nkd->nqk", q_h, k_h,
                   preferred_element_type=f32) * scale            # [NH*B, S, S]
    s = s - jnp.max(s, axis=-1, keepdims=True)
    p = jnp.exp(s)
    p = p / jnp.sum(p, axis=-1, keepdims=True)                    # exact divide
    ctx = jnp.einsum("nqk,nkd->nqd", p.astype(bf16), v_h,
                     preferred_element_type=f32)                  # [NH*B, S, dH]

    # ---- output projection: per-head partials summed over the head axis ----
    wo_h = wbig_ref[_WO_R0:_WO_R0 + H, :H].reshape(NH, dH, H)     # [NH, dH, H]
    ctx_n = ctx.reshape(NH, BS, dH).astype(bf16)                  # [NH, BS, dH]
    attn_parts = jnp.einsum("nbd,ndh->nbh", ctx_n, wo_h,
                            preferred_element_type=f32)           # [NH, BS, H]
    attn = jnp.sum(attn_parts, axis=0) + bo                       # [BS, H]

    # ---- residual + LayerNorm 1 (f32, two-pass variance) ----
    x1 = x + attn
    mu1 = jnp.mean(x1, axis=-1, keepdims=True)
    var1 = jnp.mean((x1 - mu1) ** 2, axis=-1, keepdims=True)
    x1 = (x1 - mu1) * jax.lax.rsqrt(var1 + LN_EPS) * ln1g + ln1b

    # ---- feed-forward (bf16 MXU operands, f32 accumulation / GELU) ----
    w1 = wbig_ref[_W1_R0:_W1_R0 + H, :FFN]                        # [H, FFN]
    w2 = wbig_ref[_W2_R0:_W2_R0 + FFN, :H]                        # [FFN, H]
    h1 = jnp.dot(x1.astype(bf16), w1, preferred_element_type=f32) + b1
    h1 = jax.nn.gelu(h1, approximate=True)
    h2 = jnp.dot(h1.astype(bf16), w2, preferred_element_type=f32) + b2

    # ---- residual + LayerNorm 2 ----
    x2 = x1 + h2
    mu2 = jnp.mean(x2, axis=-1, keepdims=True)
    var2 = jnp.mean((x2 - mu2) ** 2, axis=-1, keepdims=True)
    y = (x2 - mu2) * jax.lax.rsqrt(var2 + LN_EPS) * ln2g + ln2b   # [BS, H]

    o_ref[...] = y.astype(o_ref.dtype)                            # direct store


def init_params(key):
    ks = jax.random.split(key, 13)
    std = 0.02
    bf16, f32 = jnp.bfloat16, jnp.float32
    return {
        "embedding": jax.random.normal(ks[0], (VOCAB, HIDDEN), f32) * std,
        # matmul weights stored in bf16 (MXU-native; halves weight DMA bytes)
        "wqkv": (jax.random.normal(ks[1], (HIDDEN, 3 * HIDDEN), f32) * std).astype(bf16),
        "wo": (jax.random.normal(ks[2], (HIDDEN, HIDDEN), f32) * std).astype(bf16),
        "w1": (jax.random.normal(ks[3], (HIDDEN, FFN), f32) * std).astype(bf16),
        "w2": (jax.random.normal(ks[4], (FFN, HIDDEN), f32) * std).astype(bf16),
        "bqkv": jax.random.normal(ks[5], (3 * HIDDEN,), f32) * std,
        "bo": jax.random.normal(ks[6], (HIDDEN,), f32) * std,
        "b1": jax.random.normal(ks[7], (FFN,), f32) * std,
        "b2": jax.random.normal(ks[8], (HIDDEN,), f32) * std,
        "ln1_g": 1.0 + jax.random.normal(ks[9], (HIDDEN,), f32) * 0.1,
        "ln1_b": jax.random.normal(ks[10], (HIDDEN,), f32) * 0.1,
        "ln2_g": 1.0 + jax.random.normal(ks[11], (HIDDEN,), f32) * 0.1,
        "ln2_b": jax.random.normal(ks[12], (HIDDEN,), f32) * 0.1,
    }


def pack_params(params):
    """One-time host-side packing into the kernel's input buffers."""
    H, NH, dH = HIDDEN, NUM_HEADS, HEAD_DIM
    bf16, f32 = jnp.bfloat16, jnp.float32

    # embedding table augmented with a ones column (feeds the folded QKV bias)
    emb_aug = jnp.concatenate(
        [params["embedding"], jnp.ones((VOCAB, 1), f32)], axis=1)       # [V, H+1]

    # per-head augmented QKV weights: [3*NH, H+1, dH]; row H is the bias row
    w_aug = jnp.concatenate(
        [params["wqkv"], params["bqkv"].astype(bf16)[None, :]], axis=0)  # [H+1, 3H]
    wqkv_h = (w_aug.reshape(H + 1, 3, NH, dH)
              .transpose(1, 2, 0, 3)
              .reshape(3 * NH, H + 1, dH))                               # [12, H+1, dH]

    # one packed bf16 buffer for w1 / w2 / wo (natural orientations)
    w_big = jnp.zeros((_WBIG_ROWS, _PACK_LANES), bf16)
    w_big = w_big.at[_W1_R0:_W1_R0 + H, :FFN].set(params["w1"])
    w_big = w_big.at[_W2_R0:_W2_R0 + FFN, :H].set(params["w2"])
    w_big = w_big.at[_WO_R0:_WO_R0 + H, :H].set(params["wo"])

    # packed small f32 params (biases + LayerNorm)
    pk = jnp.zeros((_PACK_ROWS, _PACK_LANES), f32)
    pk = pk.at[_ROW_B1, :FFN].set(params["b1"])
    pk = pk.at[_ROW_BO, :H].set(params["bo"])
    pk = pk.at[_ROW_LN1G, :H].set(params["ln1_g"])
    pk = pk.at[_ROW_LN1B, :H].set(params["ln1_b"])
    pk = pk.at[_ROW_B2, :H].set(params["b2"])
    pk = pk.at[_ROW_LN2G, :H].set(params["ln2_g"])
    pk = pk.at[_ROW_LN2B, :H].set(params["ln2_b"])

    return {"emb_aug": emb_aug, "wqkv_h": wqkv_h, "w_big": w_big, "pk": pk}


@jax.jit
def doc_encoder_forward(token_ids, packed):
    """BaseDocEncoder-style encode: token ids -> contextual [B, S, H] states."""
    B, S = token_ids.shape
    BS = B * S
    ids2d = token_ids.reshape(BS, 1).astype(jnp.int32)

    vmem = pl.BlockSpec(memory_space=pltpu.MemorySpace.VMEM)   # whole array in VMEM
    out = pl.pallas_call(
        encoder_kernel,
        out_shape=jax.ShapeDtypeStruct((BS, HIDDEN), jnp.float32),
        in_specs=[vmem] * 5,
        out_specs=vmem,
    )(ids2d, packed["emb_aug"], packed["wqkv_h"], packed["w_big"], packed["pk"])
    return out.reshape(B, S, HIDDEN)


def doc_encoder_reference(token_ids, params):
    """Pure-JAX reference (mirrors the kernel's bf16 matmul-operand casts)."""
    f32, bf16 = jnp.float32, jnp.bfloat16
    x = jnp.take(params["embedding"], token_ids, axis=0)          # [B, S, H] f32
    B, S, H = x.shape
    dH = H // NUM_HEADS
    scale = 1.0 / math.sqrt(dH)

    qkv = jnp.einsum("bsh,hf->bsf", x.astype(bf16), params["wqkv"],
                     preferred_element_type=f32) + params["bqkv"]
    q, k, v = jnp.split(qkv, 3, axis=-1)
    q = q.reshape(B, S, NUM_HEADS, dH).transpose(0, 2, 1, 3)
    k = k.reshape(B, S, NUM_HEADS, dH).transpose(0, 2, 1, 3)
    v = v.reshape(B, S, NUM_HEADS, dH).transpose(0, 2, 1, 3)
    s = jnp.einsum("bhqd,bhkd->bhqk", q.astype(bf16), k.astype(bf16),
                   preferred_element_type=f32) * scale
    p = jax.nn.softmax(s, axis=-1)
    ctx = jnp.einsum("bhqk,bhkd->bhqd", p.astype(bf16), v.astype(bf16),
                     preferred_element_type=f32)
    attn = ctx.transpose(0, 2, 1, 3).reshape(B, S, H)
    attn = jnp.einsum("bsh,hf->bsf", attn.astype(bf16), params["wo"],
                      preferred_element_type=f32) + params["bo"]

    def ln(z, g, b):
        mu = jnp.mean(z, axis=-1, keepdims=True)
        var = jnp.mean((z - mu) ** 2, axis=-1, keepdims=True)
        return (z - mu) * jax.lax.rsqrt(var + LN_EPS) * g + b

    x1 = ln(x + attn, params["ln1_g"], params["ln1_b"])
    h = jnp.einsum("bsh,hf->bsf", x1.astype(bf16), params["w1"],
                   preferred_element_type=f32) + params["b1"]
    h = jax.nn.gelu(h, approximate=True)
    h = jnp.einsum("bsh,hf->bsf", h.astype(bf16), params["w2"],
                   preferred_element_type=f32) + params["b2"]
    return ln(x1 + h, params["ln2_g"], params["ln2_b"])


if __name__ == "__main__":
    key = jax.random.PRNGKey(0)
    k_param, k_tok = jax.random.split(key)
    params = init_params(k_param)
    packed = pack_params(params)
    token_ids = jax.random.randint(k_tok, (BATCH, SEQ), 0, VOCAB, dtype=jnp.int32)

    out = jax.block_until_ready(doc_encoder_forward(token_ids, packed))
    ref = doc_encoder_reference(token_ids, params)

    assert out.shape == (BATCH, SEQ, HIDDEN)
    # tolerance accounts for bf16 matmul operands and the bf16 folded QKV bias
    assert jnp.allclose(out, ref, rtol=2e-2, atol=2e-2), "mismatch vs JAX reference"

    print("KERNEL_OK")
</pallas_src>

<mosaic_0001>
module attributes {stable_mosaic.version = 11 : i64} {
  func.func @encoder_kernel(%arg0: memref<16x1xi32, #tpu.memory_space<vmem>>, %arg1: memref<64x33xf32, #tpu.memory_space<vmem>>, %arg2: memref<12x33x8xbf16, #tpu.memory_space<vmem>>, %arg3: memref<192x128xbf16, #tpu.memory_space<vmem>>, %arg4: memref<8x128xf32, #tpu.memory_space<vmem>>, %arg5: memref<16x32xf32, #tpu.memory_space<vmem>>) attributes {dimension_semantics = [], scalar_prefetch = 0 : i64, scratch_operands = 0 : i64, tpu.core_type = #tpu.core_type<tc>} {
    %c0 = arith.constant 0 : index
    %c0_0 = arith.constant 0 : index
    %0 = vector.load %arg0[%c0, %c0_0] : memref<16x1xi32, #tpu.memory_space<vmem>>, vector<16x1xi32>
    %1 = tpu.iota {dimensions = array<i32: 1>} : vector<16x64xi32>
    %2 = vector.broadcast %0 : vector<16x1xi32> to vector<16x64xi32>
    %3 = arith.cmpi eq, %1, %2 : vector<16x64xi32>
    %4 = arith.extui %3 : vector<16x64xi1> to vector<16x64xi32>
    %5 = arith.sitofp %4 : vector<16x64xi32> to vector<16x64xf32>
    %c0_1 = arith.constant 0 : index
    %c0_2 = arith.constant 0 : index
    %6 = vector.load %arg1[%c0_1, %c0_2] : memref<64x33xf32, #tpu.memory_space<vmem>>, vector<64x33xf32>
    %cst = arith.constant dense<0.000000e+00> : vector<16x33xf32>
    %7 = tpu.matmul %5, %6, %cst {dimension_numbers = #tpu.dot_dimension_numbers<[1], [0], [0], [1], [0, 0, 1, 1], [], []>} : vector<16x64xf32>, vector<64x33xf32>, vector<16x33xf32> -> vector<16x33xf32>
    %8 = vector.extract_strided_slice %7 {offsets = [0, 0], sizes = [16, 32], strides = [1, 1]} : vector<16x33xf32> to vector<16x32xf32>
    %9 = arith.truncf %7 : vector<16x33xf32> to vector<16x33xbf16>
    %c0_3 = arith.constant 0 : index
    %c0_4 = arith.constant 0 : index
    %10 = vector.load %arg4[%c0_3, %c0_4] : memref<8x128xf32, #tpu.memory_space<vmem>>, vector<8x128xf32>
    %11 = vector.extract_strided_slice %10 {offsets = [0, 0], sizes = [1, 128], strides = [1, 1]} : vector<8x128xf32> to vector<1x128xf32>
    %12 = vector.extract_strided_slice %10 {offsets = [1, 0], sizes = [1, 32], strides = [1, 1]} : vector<8x128xf32> to vector<1x32xf32>
    %13 = vector.extract_strided_slice %10 {offsets = [2, 0], sizes = [1, 32], strides = [1, 1]} : vector<8x128xf32> to vector<1x32xf32>
    %14 = vector.extract_strided_slice %10 {offsets = [3, 0], sizes = [1, 32], strides = [1, 1]} : vector<8x128xf32> to vector<1x32xf32>
    %15 = vector.extract_strided_slice %10 {offsets = [4, 0], sizes = [1, 32], strides = [1, 1]} : vector<8x128xf32> to vector<1x32xf32>
    %16 = vector.extract_strided_slice %10 {offsets = [5, 0], sizes = [1, 32], strides = [1, 1]} : vector<8x128xf32> to vector<1x32xf32>
    %17 = vector.extract_strided_slice %10 {offsets = [6, 0], sizes = [1, 32], strides = [1, 1]} : vector<8x128xf32> to vector<1x32xf32>
    %18 = vector.shape_cast %9 : vector<16x33xbf16> to vector<1x16x33xbf16>
    %19 = vector.shape_cast %18 : vector<1x16x33xbf16> to vector<1x16x33xbf16>
    %20 = vector.broadcast %19 : vector<1x16x33xbf16> to vector<12x16x33xbf16>
    %c0_5 = arith.constant 0 : index
    %c0_6 = arith.constant 0 : index
    %c0_7 = arith.constant 0 : index
    %21 = vector.load %arg2[%c0_5, %c0_6, %c0_7] : memref<12x33x8xbf16, #tpu.memory_space<vmem>>, vector<12x33x8xbf16>
    "tpu.trace_start"() <{level = 10 : i32, message = "nbh,nhd->nbd"}> : () -> ()
    %cst_8 = arith.constant dense<0.000000e+00> : vector<12x16x8xf32>
    %22 = tpu.matmul %20, %21, %cst_8 {dimension_numbers = #tpu.dot_dimension_numbers<[2], [1], [1], [2], [0, 0, 0, 1, 1, 2], [0], [0]>} : vector<12x16x33xbf16>, vector<12x33x8xbf16>, vector<12x16x8xf32> -> vector<12x16x8xf32>
    "tpu.trace_stop"() : () -> ()
    %23 = vector.extract_strided_slice %22 {offsets = [0, 0, 0], sizes = [4, 16, 8], strides = [1, 1, 1]} : vector<12x16x8xf32> to vector<4x16x8xf32>
    %24 = vector.shape_cast %23 : vector<4x16x8xf32> to vector<8x8x8xf32>
    %25 = arith.truncf %24 : vector<8x8x8xf32> to vector<8x8x8xbf16>
    %26 = vector.extract_strided_slice %22 {offsets = [4, 0, 0], sizes = [4, 16, 8], strides = [1, 1, 1]} : vector<12x16x8xf32> to vector<4x16x8xf32>
    %27 = vector.shape_cast %26 : vector<4x16x8xf32> to vector<8x8x8xf32>
    %28 = arith.truncf %27 : vector<8x8x8xf32> to vector<8x8x8xbf16>
    %29 = vector.extract_strided_slice %22 {offsets = [8, 0, 0], sizes = [4, 16, 8], strides = [1, 1, 1]} : vector<12x16x8xf32> to vector<4x16x8xf32>
    %30 = vector.shape_cast %29 : vector<4x16x8xf32> to vector<8x8x8xf32>
    %31 = arith.truncf %30 : vector<8x8x8xf32> to vector<8x8x8xbf16>
    "tpu.trace_start"() <{level = 10 : i32, message = "nqd,nkd->nqk"}> : () -> ()
    %cst_9 = arith.constant dense<0.000000e+00> : vector<8x8x8xf32>
    %32 = tpu.matmul %25, %28, %cst_9 {dimension_numbers = #tpu.dot_dimension_numbers<[2], [2], [1], [1], [0, 0, 0, 1, 1, 1], [0], [0]>} : vector<8x8x8xbf16>, vector<8x8x8xbf16>, vector<8x8x8xf32> -> vector<8x8x8xf32>
    "tpu.trace_stop"() : () -> ()
    %cst_10 = arith.constant 0.353553385 : f32
    %33 = vector.broadcast %cst_10 : f32 to vector<8x8x8xf32>
    %34 = arith.mulf %32, %33 : vector<8x8x8xf32>
    %cst_11 = arith.constant dense<0xFF800000> : vector<8x8xf32>
    %35 = vector.multi_reduction <maximumf>, %34, %cst_11 [2] : vector<8x8x8xf32> to vector<8x8xf32>
    %36 = vector.shape_cast %35 : vector<8x8xf32> to vector<8x8x1xf32>
    %37 = vector.broadcast %36 : vector<8x8x1xf32> to vector<8x8x8xf32>
    %38 = arith.subf %34, %37 : vector<8x8x8xf32>
    %39 = math.exp %38 : vector<8x8x8xf32>
    %cst_12 = arith.constant dense<0.000000e+00> : vector<8x8xf32>
    %40 = vector.multi_reduction <add>, %39, %cst_12 [2] : vector<8x8x8xf32> to vector<8x8xf32>
    %41 = vector.shape_cast %40 : vector<8x8xf32> to vector<8x8x1xf32>
    %42 = vector.broadcast %41 : vector<8x8x1xf32> to vector<8x8x8xf32>
    %43 = arith.divf %39, %42 : vector<8x8x8xf32>
    %44 = arith.truncf %43 : vector<8x8x8xf32> to vector<8x8x8xbf16>
    "tpu.trace_start"() <{level = 10 : i32, message = "nqk,nkd->nqd"}> : () -> ()
    %cst_13 = arith.constant dense<0.000000e+00> : vector<8x8x8xf32>
    %45 = tpu.matmul %44, %31, %cst_13 {dimension_numbers = #tpu.dot_dimension_numbers<[2], [1], [1], [2], [0, 0, 0, 1, 1, 2], [0], [0]>} : vector<8x8x8xbf16>, vector<8x8x8xbf16>, vector<8x8x8xf32> -> vector<8x8x8xf32>
    "tpu.trace_stop"() : () -> ()
    %c160 = arith.constant 160 : index
    %c0_14 = arith.constant 0 : index
    %46 = vector.load %arg3[%c160, %c0_14] : memref<192x128xbf16, #tpu.memory_space<vmem>>, vector<32x32xbf16>
    %47 = vector.shape_cast %46 : vector<32x32xbf16> to vector<4x8x32xbf16>
    %48 = vector.shape_cast %45 : vector<8x8x8xf32> to vector<4x16x8xf32>
    %49 = arith.truncf %48 : vector<4x16x8xf32> to vector<4x16x8xbf16>
    "tpu.trace_start"() <{level = 10 : i32, message = "nbd,ndh->nbh"}> : () -> ()
    %cst_15 = arith.constant dense<0.000000e+00> : vector<4x16x32xf32>
    %50 = tpu.matmul %49, %47, %cst_15 {dimension_numbers = #tpu.dot_dimension_numbers<[2], [1], [1], [2], [0, 0, 0, 1, 1, 2], [0], [0]>} : vector<4x16x8xbf16>, vector<4x8x32xbf16>, vector<4x16x32xf32> -> vector<4x16x32xf32>
    "tpu.trace_stop"() : () -> ()
    %cst_16 = arith.constant dense<0.000000e+00> : vector<16x32xf32>
    %51 = vector.multi_reduction <add>, %50, %cst_16 [0] : vector<4x16x32xf32> to vector<16x32xf32>
    %52 = vector.broadcast %12 : vector<1x32xf32> to vector<16x32xf32>
    %53 = arith.addf %51, %52 : vector<16x32xf32>
    %54 = arith.addf %8, %53 : vector<16x32xf32>
    %cst_17 = arith.constant dense<0.000000e+00> : vector<16xf32>
    %55 = vector.multi_reduction <add>, %54, %cst_17 [1] : vector<16x32xf32> to vector<16xf32>
    %56 = vector.shape_cast %55 : vector<16xf32> to vector<16x1xf32>
    %cst_18 = arith.constant 3.200000e+01 : f32
    %57 = vector.broadcast %cst_18 : f32 to vector<16x1xf32>
    %58 = arith.divf %56, %57 : vector<16x1xf32>
    %59 = vector.broadcast %58 : vector<16x1xf32> to vector<16x32xf32>
    %60 = arith.subf %54, %59 : vector<16x32xf32>
    %61 = arith.mulf %60, %60 : vector<16x32xf32>
    %cst_19 = arith.constant dense<0.000000e+00> : vector<16xf32>
    %62 = vector.multi_reduction <add>, %61, %cst_19 [1] : vector<16x32xf32> to vector<16xf32>
    %63 = vector.shape_cast %62 : vector<16xf32> to vector<16x1xf32>
    %cst_20 = arith.constant 3.200000e+01 : f32
    %64 = vector.broadcast %cst_20 : f32 to vector<16x1xf32>
    %65 = arith.divf %63, %64 : vector<16x1xf32>
    %66 = vector.broadcast %58 : vector<16x1xf32> to vector<16x32xf32>
    %67 = arith.subf %54, %66 : vector<16x32xf32>
    %cst_21 = arith.constant 9.99999974E-6 : f32
    %68 = vector.broadcast %cst_21 : f32 to vector<16x1xf32>
    %69 = arith.addf %65, %68 : vector<16x1xf32>
    %70 = math.rsqrt %69 : vector<16x1xf32>
    %71 = vector.broadcast %70 : vector<16x1xf32> to vector<16x32xf32>
    %72 = arith.mulf %67, %71 : vector<16x32xf32>
    %73 = vector.broadcast %13 : vector<1x32xf32> to vector<16x32xf32>
    %74 = arith.mulf %72, %73 : vector<16x32xf32>
    %75 = vector.broadcast %14 : vector<1x32xf32> to vector<16x32xf32>
    %76 = arith.addf %74, %75 : vector<16x32xf32>
    %c0_22 = arith.constant 0 : index
    %c0_23 = arith.constant 0 : index
    %77 = vector.load %arg3[%c0_22, %c0_23] : memref<192x128xbf16, #tpu.memory_space<vmem>>, vector<32x128xbf16>
    %c32 = arith.constant 32 : index
    %c0_24 = arith.constant 0 : index
    %78 = vector.load %arg3[%c32, %c0_24] : memref<192x128xbf16, #tpu.memory_space<vmem>>, vector<128x32xbf16>
    %79 = arith.truncf %76 : vector<16x32xf32> to vector<16x32xbf16>
    %cst_25 = arith.constant dense<0.000000e+00> : vector<16x128xf32>
    %80 = tpu.matmul %79, %77, %cst_25 {dimension_numbers = #tpu.dot_dimension_numbers<[1], [0], [0], [1], [0, 0, 1, 1], [], []>} : vector<16x32xbf16>, vector<32x128xbf16>, vector<16x128xf32> -> vector<16x128xf32>
    %81 = vector.broadcast %11 : vector<1x128xf32> to vector<16x128xf32>
    %82 = arith.addf %80, %81 : vector<16x128xf32>
    %83 = arith.mulf %82, %82 : vector<16x128xf32>
    %84 = arith.mulf %82, %83 : vector<16x128xf32>
    %cst_26 = arith.constant 4.471500e-02 : f32
    %85 = vector.broadcast %cst_26 : f32 to vector<16x128xf32>
    %86 = arith.mulf %85, %84 : vector<16x128xf32>
    %87 = arith.addf %82, %86 : vector<16x128xf32>
    %cst_27 = arith.constant 0.797884583 : f32
    %88 = vector.broadcast %cst_27 : f32 to vector<16x128xf32>
    %89 = arith.mulf %88, %87 : vector<16x128xf32>
    %90 = math.tanh %89 : vector<16x128xf32>
    %cst_28 = arith.constant 1.000000e+00 : f32
    %91 = vector.broadcast %cst_28 : f32 to vector<16x128xf32>
    %92 = arith.addf %91, %90 : vector<16x128xf32>
    %cst_29 = arith.constant 5.000000e-01 : f32
    %93 = vector.broadcast %cst_29 : f32 to vector<16x128xf32>
    %94 = arith.mulf %93, %92 : vector<16x128xf32>
    %95 = arith.mulf %82, %94 : vector<16x128xf32>
    %96 = arith.truncf %95 : vector<16x128xf32> to vector<16x128xbf16>
    %cst_30 = arith.constant dense<0.000000e+00> : vector<16x32xf32>
    %97 = tpu.matmul %96, %78, %cst_30 {dimension_numbers = #tpu.dot_dimension_numbers<[1], [0], [0], [1], [0, 0, 1, 1], [], []>} : vector<16x128xbf16>, vector<128x32xbf16>, vector<16x32xf32> -> vector<16x32xf32>
    %98 = vector.broadcast %15 : vector<1x32xf32> to vector<16x32xf32>
    %99 = arith.addf %97, %98 : vector<16x32xf32>
    %100 = arith.addf %76, %99 : vector<16x32xf32>
    %cst_31 = arith.constant dense<0.000000e+00> : vector<16xf32>
    %101 = vector.multi_reduction <add>, %100, %cst_31 [1] : vector<16x32xf32> to vector<16xf32>
    %102 = vector.shape_cast %101 : vector<16xf32> to vector<16x1xf32>
    %cst_32 = arith.constant 3.200000e+01 : f32
    %103 = vector.broadcast %cst_32 : f32 to vector<16x1xf32>
    %104 = arith.divf %102, %103 : vector<16x1xf32>
    %105 = vector.broadcast %104 : vector<16x1xf32> to vector<16x32xf32>
    %106 = arith.subf %100, %105 : vector<16x32xf32>
    %107 = arith.mulf %106, %106 : vector<16x32xf32>
    %cst_33 = arith.constant dense<0.000000e+00> : vector<16xf32>
    %108 = vector.multi_reduction <add>, %107, %cst_33 [1] : vector<16x32xf32> to vector<16xf32>
    %109 = vector.shape_cast %108 : vector<16xf32> to vector<16x1xf32>
    %cst_34 = arith.constant 3.200000e+01 : f32
    %110 = vector.broadcast %cst_34 : f32 to vector<16x1xf32>
    %111 = arith.divf %109, %110 : vector<16x1xf32>
    %112 = vector.broadcast %104 : vector<16x1xf32> to vector<16x32xf32>
    %113 = arith.subf %100, %112 : vector<16x32xf32>
    %cst_35 = arith.constant 9.99999974E-6 : f32
    %114 = vector.broadcast %cst_35 : f32 to vector<16x1xf32>
    %115 = arith.addf %111, %114 : vector<16x1xf32>
    %116 = math.rsqrt %115 : vector<16x1xf32>
    %117 = vector.broadcast %116 : vector<16x1xf32> to vector<16x32xf32>
    %118 = arith.mulf %113, %117 : vector<16x32xf32>
    %119 = vector.broadcast %16 : vector<1x32xf32> to vector<16x32xf32>
    %120 = arith.mulf %118, %119 : vector<16x32xf32>
    %121 = vector.broadcast %17 : vector<1x32xf32> to vector<16x32xf32>
    %122 = arith.addf %120, %121 : vector<16x32xf32>
    %c0_36 = arith.constant 0 : index
    %c0_37 = arith.constant 0 : index
    %123 = vector.load %arg5[%c0_36, %c0_37] : memref<16x32xf32, #tpu.memory_space<vmem>>, vector<16x32xf32>
    tpu.vector_store %arg5[%c0_36, %c0_37], %122 {strides = array<i32>} : memref<16x32xf32, #tpu.memory_space<vmem>>, vector<16x32xf32>,
    return
  }
}

</mosaic_0001>

<bundles_post_ra>
// kernel: doc_encoder_forward.1
= control target key start
LH: loop header
LB: loop body
LE: loop exit
PB: predicated region body
PF: predicated region fallthrough
CT: control target
= control target key end

     0   :  { %vm209_vm0 = vcmask 1040384   ;;  %v2879_v2 = vmov 0   ;;  %v2880_v6 = vmov 0.0   ;;  %s3440_s0 = inlined_call_operand.vmem [shape: s32[16,1], index: 0, kind: input, shape index: {}]   ;;  %s3441_s1 = inlined_call_operand.vmem [shape: f32[64,33], index: 1, kind: input, shape index: {}]   ;;  %s3442_s2 = inlined_call_operand.vmem [shape: bf16[12,33,8], index: 2, kind: input, shape index: {}]   ;;  %s3443_s3 = inlined_call_operand.vmem [shape: bf16[192,128], index: 3, kind: input, shape index: {}]   ;;  %s3444_s4 = inlined_call_operand.vmem [shape: f32[8,128], index: 4, kind: input, shape index: {}]   ;;  %s3445_s5 = inlined_call_operand.hbm [shape: f32[16,32], index: 5, kind: output, shape index: {}]  }
   0x1   :  { %v22_v0 = vld [vmem:[%s3440_s0] sm:$0xff]  ;;  %v45_v1 = vld [vmem:[%s3441_s1 + $0x38] sm:$0xff]  ;;  %2766 = vset.pattern.permute.xlu0 %v2879_v2  ;;  %v44_v3 = vld [vmem:[%s3441_s1 + $0x30] sm:$0xff]  ;;  %2512 = vmatprep.subr.bf16.mxu0 %v2880_v6  ;;  %v2931_v7 = vsel %vm209_vm0, 65535, %v2879_v2 }
   0x2   :  { %2473 = vmatprep.subr.mxu1 %v45_v1  ;;  %27 = vperm.xlu0 %2766, %v22_v0   ;;  %v43_v4 = vld [vmem:[%s3441_s1 + $0x28] sm:$0xff]  ;;  %v42_v8 = vld [vmem:[%s3441_s1 + $0x20] sm:$0xff]  ;;  %v41_v9 = vld [vmem:[%s3441_s1 + $0x18] sm:$0xff] }
   0x3   :  { %2474 = vmatpush3.msra.mxu1 %v45_v1  ;;  %v23_v5 = vld [vmem:[%s3440_s0 + $0x8] sm:$0xff]  ;;  %v2768_v10 = vld [vmem:[%s3442_s2 + $0x38] ss:$0 sps:$4 sm:$0x11]   ;;  %v40_v11 = vld [vmem:[%s3441_s1 + $0x10] sm:$0xff] }
   0x4   :  { %2475 = vmatprep.subr.mxu1 %v44_v3  ;;  %v331_v12 = vand.u32 %v2768_v10, %v2931_v7  ;;  %v39_v13 = vld [vmem:[%s3441_s1 + $0x8] sm:$0xff]  ;;  %v2770_v14 = vld [vmem:[%s3442_s2 + $0x30] sm:$0xff]   ;;  %v38_v15 = vld [vmem:[%s3441_s1] sm:$0xff] }
   0x5   :  { %2476 = vmatpush3.msra.mxu1 %v44_v3 }
   0x6   :  { %2477 = vmatprep.subr.mxu1 %v43_v4  ;;  %30 = vperm.xlu0 %2766, %v23_v5  }
   0x7   :  { %2478 = vmatpush3.msra.mxu1 %v43_v4  ;;  %2513 = vmatpush3.bf16.msra.mxu0 %v331_v12 }
   0x8   :  { %2479 = vmatprep.subr.mxu1 %v42_v8  ;;  %2514 = vmatprep.subr.bf16.mxu0 %v2880_v6 }
   0x9   :  { %2480 = vmatpush3.msra.mxu1 %v42_v8 }
   0xa   :  { %2481 = vmatprep.subr.mxu1 %v41_v9 }
   0xb   :  { %2482 = vmatpush3.msra.mxu1 %v41_v9  ;;  %2515 = vmatpush3.bf16.msra.mxu0 %v2770_v14 }
   0xc   :  { %2483 = vmatprep.subr.mxu1 %v40_v11  ;;  %2516 = vmatprep.subr.bf16.mxu0 %v2880_v6 }
   0xd   :  { %2484 = vmatpush3.msra.mxu1 %v40_v11 }
   0xe   :  { %2485 = vmatprep.subr.mxu1 %v39_v13 }
   0xf   :  { %2486 = vmatpush3.msra.mxu1 %v39_v13 }
  0x10   :  { %2487 = vmatprep.subr.mxu1 %v38_v15 }
  0x11   :  { %2488 = vmatpush3.msra.mxu1 %v38_v15 }
  0x12   :  { %2492 = vmatprep.subr.bf16.mxu1 %v2880_v6 }
  0x13   :  { %10 = vsyncpa [#allocation3], 0  ;;  %v24_v16 = vlaneseq  ;;  %vm46_vm1 = vcmask 523264   ;;  %v2767_v19 = vld [vmem:[%s3442_s2 + $0x10] ss:$0 sps:$4 sm:$0x11]  }
  0x14   :  { %v213_v22 = vand.u32 %v2767_v19, %v2931_v7  ;;  %v2769_v24 = vld [vmem:[%s3442_s2 + $0x8] sm:$0xff]   ;;  %v2771_v25 = vld [vmem:[%s3442_s2] sm:$0xff]   ;;  %vm2881_vm4 = vmmov 0   ;;  %vm205_vm5 = vcmask 269312   ;;  %v2776_v35 = vld [vmem:[%s3442_s2 + $0x58] sm:$0xff]   ;;  %vm929_vm6 = vcmask 64512  }
  0x15   :  { %v25_v17 = vand.u32 127, %v24_v16  ;;  %v2772_v26 = vld [vmem:[%s3442_s2 + $0x28] sm:$0xff]   ;;  %2518 = vmatprep.mubr.msk.bf16.mxu0 %vm2881_vm4, %v2880_v6  ;;  %v2773_v27 = vld [vmem:[%s3442_s2 + $0x24] ss:$0 sps:$4 sm:$0x11]   ;;  %v2775_v34 = vld [vmem:[%s3442_s2 + $0x1c] sm:$0xff]  }
  0x16   :  { %2517 = vmatpush3.bf16.msra.mxu0 %v2772_v26  ;;  %v2774_v28 = vld [vmem:[%s3442_s2 + $0x60] ss:$0 sps:$4 sm:$0x11]   ;;  %v272_v31 = vand.u32 %v2773_v27, %v2931_v7  ;;  %v2777_v36 = vld [vmem:[%s3442_s2 + $0x14] sm:$0xff]   ;;  %v2781_v42 = vld [vmem:[%s3442_s2 + $0x44] sm:$0xff]   ;;  %vm1405_vm7 = vcmask 1043456  }
  0x17   :  { %2532 = vmatprep.subr.bf16.mxu0 %v2880_v6  ;;  %v449_v32 = vand.u32 %v2774_v28, %v2931_v7  ;;  %v2778_v37 = vld [vmem:[%s3442_s2 + $0x50] sm:$0xff]   ;;  %v2779_v38 = vld [vmem:[%s3442_s2 + $0x4c] ss:$0 sps:$4 sm:$0x11]   ;;  %v2782_v43 = vld [vmem:[%s3442_s2 + $0x80] sm:$0xff]   ;;  %vm1967_vm8 = vcmask 261120  }
  0x18   :  { %v2780_v39 = vld [vmem:[%s3442_s2 + $0x88] ss:$0 sps:$4 sm:$0x11]   ;;  %v390_v40 = vand.u32 %v2779_v38, %v2931_v7  ;;  %v2783_v44 = vld [vmem:[%s3442_s2 + $0x3c] sm:$0xff]   ;;  %v2787_v50 = vld [vmem:[%s3442_s2 + $0x6c] sm:$0xff]  }
  0x19   :  { %v567_v41 = vand.u32 %v2780_v39, %v2931_v7  ;;  %v2784_v45 = vld [vmem:[%s3442_s2 + $0x78] sm:$0xff]   ;;  %v2785_v46 = vld [vmem:[%s3442_s2 + $0x74] ss:$0 sps:$4 sm:$0x11]   ;;  %v2788_v51 = vld [vmem:[%s3442_s2 + $0xa8] sm:$0xff]  }
  0x1a   :  { %v2786_v47 = vld [vmem:[%s3442_s2 + $0xb0] ss:$0 sps:$4 sm:$0x11]   ;;  %v508_v48 = vand.u32 %v2785_v46, %v2931_v7  ;;  %v2789_v52 = vld [vmem:[%s3442_s2 + $0x64] sm:$0xff]   ;;  %v2793_v58 = vld [vmem:[%s3442_s2 + $0x94] sm:$0xff]  }
  0x1b   :  { %v685_v49 = vand.u32 %v2786_v47, %v2931_v7  ;;  %v2790_v53 = vld [vmem:[%s3442_s2 + $0xa0] sm:$0xff]   ;;  %v2791_v54 = vld [vmem:[%s3442_s2 + $0x9c] ss:$0 sps:$4 sm:$0x11]   ;;  %v2794_v59 = vld [vmem:[%s3442_s2 + $0xd0] sm:$0xff]  }
  0x1c   :  { %v2792_v55 = vld [vmem:[%s3442_s2 + $0xd8] ss:$0 sps:$4 sm:$0x11]   ;;  %v626_v56 = vand.u32 %v2791_v54, %v2931_v7  ;;  %v2795_v60 = vld [vmem:[%s3442_s2 + $0x8c] sm:$0xff]   ;;  %v2798_v0 = vld [vmem:[%s3442_s2 + $0xbc] sm:$0xff]  }
  0x1d   :  { %v803_v57 = vand.u32 %v2792_v55, %v2931_v7  ;;  %v2796_v61 = vld [vmem:[%s3442_s2 + $0xc8] sm:$0xff]   ;;  %v2797_v62 = vld [vmem:[%s3442_s2 + $0xc4] ss:$0 sps:$4 sm:$0x11]   ;;  %v2799_v1 = vld [vmem:[%s3442_s2 + $0xb4] sm:$0xff]  }
  0x1e   :  { %v744_v63 = vand.u32 %v2797_v62, %v2931_v7  ;;  %v2800_v2 = vld [vmem:[%s3442_s2 + $0xec] ss:$0 sps:$4 sm:$0x11]   ;;  %v2801_v4 = vld [vmem:[%s3442_s2 + $0xe4] sm:$0xff]   ;;  %v2802_v5 = vld [vmem:[%s3442_s2 + $0xdc] sm:$0xff]  }
  0x1f   :  { %v862_v3 = vand.u32 %v2800_v2, %v2931_v7 }
  0x7d   :  { %v28_v18 = vpop.permute.xlu0 %27 }
  0x7e   :  { %vm32_vm2 = vcmp.eq.s32.totalorder %v25_v17, %v28_v18 }
  0x7f   :  { %v2280_v20 = vsel %vm32_vm2, 1.0, %v2880_v6 }
  0x80   :  { %2489 = vmatprep.mubr.msk.f32.mxu1 %vm46_vm1, %v2280_v20 }
  0x81   :  { %v31_v21 = vpop.permute.xlu0 %30 }
  0x82   :  { %vm33_vm3 = vcmp.eq.s32.totalorder %v25_v17, %v31_v21 }
  0x83   :  { %v2281_v23 = vsel %vm33_vm3, 1.0, %v2880_v6 }
  0x84   :  { %2490 = vmatmul.mubr.msk.f32.vlgmr.msra.gmra.mxu1 %vm46_vm1, %v2281_v23 }
  0x85   :  { %2493 = vmatpush3.bf16.msra.mxu1 %v213_v22  ;;  %2498 = vmatprep.mubr.msk.bf16.mxu1 %vm2881_vm4, %v2880_v6 }
  0x86   :  { %2494 = vmatprep.subr.bf16.mxu1 %v2880_v6 }
  0x89   :  { %2495 = vmatpush3.bf16.msra.mxu1 %v2769_v24 }
  0x8a   :  { %2496 = vmatprep.subr.bf16.mxu1 %v2880_v6 }
  0x8d   :  { %2497 = vmatpush3.bf16.msra.mxu1 %v2771_v25 }
  0x8e   :  { %2502 = vmatprep.subr.bf16.mxu1 %v2880_v6 }
 0x144   :  { %v2988_v29 = vpop.f32.mrf.mxu1 }
 0x146   :  { %v2990_v30 = vpop.f32.mrf.mxu1 }
 0x147   :  { %v2996_v33 = vpack.c.bf16 %v2988_v29, %v2990_v30 }
 0x149   :  { %2499 = vmatmul.mubr.msk.bf16.vlgmr.msra.gmra.mxu1 %vm205_vm5, %v2996_v33  ;;  %2519 = vmatmul.mubr.msk.bf16.vlgmr.msra.gmra.mxu0 %vm205_vm5, %v2996_v33 }
 0x14a   :  { %2503 = vmatpush3.bf16.msra.mxu1 %v272_v31  ;;  %2533 = vmatpush3.bf16.msra.mxu0 %v449_v32 }
 0x14b   :  { %2504 = vmatprep.subr.bf16.mxu1 %v2880_v6  ;;  %2534 = vmatprep.subr.bf16.mxu0 %v2880_v6 }
 0x14c   :  { %2508 = vmatprep.mubr.msk.bf16.mxu1 %vm2881_vm4, %v2880_v6  ;;  %2538 = vmatprep.mubr.msk.bf16.mxu0 %vm2881_vm4, %v2880_v6 }
 0x14e   :  { %2505 = vmatpush3.bf16.msra.mxu1 %v2775_v34  ;;  %2535 = vmatpush3.bf16.msra.mxu0 %v2776_v35 }
 0x14f   :  { %2506 = vmatprep.subr.bf16.mxu1 %v2880_v6  ;;  %2536 = vmatprep.subr.bf16.mxu0 %v2880_v6 }
 0x152   :  { %2507 = vmatpush3.bf16.msra.mxu1 %v2777_v36  ;;  %2537 = vmatpush3.bf16.msra.mxu0 %v2778_v37 }
 0x153   :  { %2522 = vmatprep.subr.bf16.mxu1 %v2880_v6  ;;  %2552 = vmatprep.subr.bf16.mxu0 %v2880_v6 }
 0x155   :  { %2509 = vmatmul.mubr.msk.bf16.vlgmr.msra.gmra.mxu1 %vm205_vm5, %v2996_v33  ;;  %2539 = vmatmul.mubr.msk.bf16.vlgmr.msra.gmra.mxu0 %vm205_vm5, %v2996_v33 }
 0x156   :  { %2523 = vmatpush3.bf16.msra.mxu1 %v390_v40  ;;  %2553 = vmatpush3.bf16.msra.mxu0 %v567_v41 }
 0x157   :  { %2524 = vmatprep.subr.bf16.mxu1 %v2880_v6  ;;  %2554 = vmatprep.subr.bf16.mxu0 %v2880_v6 }
 0x158   :  { %2528 = vmatprep.mubr.msk.bf16.mxu1 %vm2881_vm4, %v2880_v6  ;;  %2558 = vmatprep.mubr.msk.bf16.mxu0 %vm2881_vm4, %v2880_v6 }
 0x15a   :  { %2525 = vmatpush3.bf16.msra.mxu1 %v2781_v42  ;;  %2555 = vmatpush3.bf16.msra.mxu0 %v2782_v43 }
 0x15b   :  { %2526 = vmatprep.subr.bf16.mxu1 %v2880_v6  ;;  %2556 = vmatprep.subr.bf16.mxu0 %v2880_v6 }
 0x15e   :  { %2527 = vmatpush3.bf16.msra.mxu1 %v2783_v44  ;;  %2557 = vmatpush3.bf16.msra.mxu0 %v2784_v45 }
 0x15f   :  { %2542 = vmatprep.subr.bf16.mxu1 %v2880_v6  ;;  %2572 = vmatprep.subr.bf16.mxu0 %v2880_v6 }
 0x161   :  { %2529 = vmatmul.mubr.msk.bf16.vlgmr.msra.gmra.mxu1 %vm205_vm5, %v2996_v33  ;;  %2559 = vmatmul.mubr.msk.bf16.vlgmr.msra.gmra.mxu0 %vm205_vm5, %v2996_v33 }
 0x162   :  { %2543 = vmatpush3.bf16.msra.mxu1 %v508_v48  ;;  %2573 = vmatpush3.bf16.msra.mxu0 %v685_v49 }
 0x163   :  { %2544 = vmatprep.subr.bf16.mxu1 %v2880_v6  ;;  %2574 = vmatprep.subr.bf16.mxu0 %v2880_v6 }
 0x164   :  { %2548 = vmatprep.mubr.msk.bf16.mxu1 %vm2881_vm4, %v2880_v6  ;;  %2578 = vmatprep.mubr.msk.bf16.mxu0 %vm2881_vm4, %v2880_v6 }
 0x166   :  { %2545 = vmatpush3.bf16.msra.mxu1 %v2787_v50  ;;  %2575 = vmatpush3.bf16.msra.mxu0 %v2788_v51 }
 0x167   :  { %2546 = vmatprep.subr.bf16.mxu1 %v2880_v6  ;;  %2576 = vmatprep.subr.bf16.mxu0 %v2880_v6 }
 0x16a   :  { %2547 = vmatpush3.bf16.msra.mxu1 %v2789_v52  ;;  %2577 = vmatpush3.bf16.msra.mxu0 %v2790_v53 }
 0x16b   :  { %2562 = vmatprep.subr.bf16.mxu1 %v2880_v6  ;;  %2592 = vmatprep.subr.bf16.mxu0 %v2880_v6 }
 0x16d   :  { %2549 = vmatmul.mubr.msk.bf16.vlgmr.msra.gmra.mxu1 %vm205_vm5, %v2996_v33  ;;  %2579 = vmatmul.mubr.msk.bf16.vlgmr.msra.gmra.mxu0 %vm205_vm5, %v2996_v33 }
 0x16e   :  { %2563 = vmatpush3.bf16.msra.mxu1 %v626_v56  ;;  %2593 = vmatpush3.bf16.msra.mxu0 %v803_v57 }
 0x16f   :  { %2564 = vmatprep.subr.bf16.mxu1 %v2880_v6  ;;  %2594 = vmatprep.subr.bf16.mxu0 %v2880_v6 }
 0x170   :  { %2568 = vmatprep.mubr.msk.bf16.mxu1 %vm2881_vm4, %v2880_v6  ;;  %2598 = vmatprep.mubr.msk.bf16.mxu0 %vm2881_vm4, %v2880_v6 }
 0x172   :  { %2565 = vmatpush3.bf16.msra.mxu1 %v2793_v58  ;;  %2595 = vmatpush3.bf16.msra.mxu0 %v2794_v59 }
 0x173   :  { %2566 = vmatprep.subr.bf16.mxu1 %v2880_v6  ;;  %2596 = vmatprep.subr.bf16.mxu0 %v2880_v6 }
 0x176   :  { %2567 = vmatpush3.bf16.msra.mxu1 %v2795_v60  ;;  %2597 = vmatpush3.bf16.msra.mxu0 %v2796_v61 }
 0x177   :  { %2582 = vmatprep.subr.bf16.mxu1 %v2880_v6  ;;  %2612 = vmatprep.subr.bf16.mxu0 %v2880_v6 }
 0x179   :  { %2569 = vmatmul.mubr.msk.bf16.vlgmr.msra.gmra.mxu1 %vm205_vm5, %v2996_v33  ;;  %2599 = vmatmul.mubr.msk.bf16.vlgmr.msra.gmra.mxu0 %vm205_vm5, %v2996_v33 }
 0x17a   :  { %2583 = vmatpush3.bf16.msra.mxu1 %v744_v63  ;;  %2588 = vmatprep.mubr.msk.bf16.mxu1 %vm2881_vm4, %v2880_v6 }
 0x17b   :  { %2584 = vmatprep.subr.bf16.mxu1 %v2880_v6  ;;  %2614 = vmatprep.mubr.msk.bf16.mxu0 %vm2881_vm4, %v2880_v6 }
 0x17e   :  { %2585 = vmatpush3.bf16.msra.mxu1 %v2798_v0 }
 0x17f   :  { %2586 = vmatprep.subr.bf16.mxu1 %v2880_v6 }
 0x182   :  { %2587 = vmatpush3.bf16.msra.mxu1 %v2799_v1 }
 0x183   :  { %2602 = vmatprep.subr.bf16.mxu1 %v2880_v6 }
 0x185   :  { %2589 = vmatmul.mubr.msk.bf16.vlgmr.msra.gmra.mxu1 %vm205_vm5, %v2996_v33 }
 0x186   :  { %2603 = vmatpush3.bf16.msra.mxu1 %v862_v3  ;;  %2608 = vmatprep.mubr.msk.bf16.mxu1 %vm2881_vm4, %v2880_v6 }
 0x187   :  { %2604 = vmatprep.subr.bf16.mxu1 %v2880_v6 }
 0x18a   :  { %2605 = vmatpush3.bf16.msra.mxu1 %v2801_v4 }
 0x18b   :  { %2606 = vmatprep.subr.bf16.mxu1 %v2880_v6 }
 0x18e   :  { %2607 = vmatpush3.bf16.msra.mxu1 %v2802_v5 }
 0x18f   :  { %2624 = vmatprep.subr.bf16.mxu1 %v2880_v6 }
 0x191   :  { %2609 = vmatmul.mubr.msk.bf16.vlgmr.msra.gmra.mxu1 %vm205_vm5, %v2996_v33 }
 0x192   :  { %2626 = vmatprep.mubr.msk.bf16.mxu1 %vm2881_vm4, %v2880_v6 }
 0x209   :  { %v249_v7 = vpop.f32.mrf.mxu1  ;;  %v3168_v8 = vpop.f32.mrf.mxu0 }
 0x20a   :  { %v905_v27 = vpack.c.bf16 %v249_v7, %v249_v7  ;;  %v909_v1 = vpack.c.bf16 %v3168_v8, %v3168_v8 }
 0x20b   :  { %v2500_v9 = vpop.f32.mrf.mxu1  ;;  %v2520_v10 = vpop.f32.mrf.mxu0 }
 0x20d   :  { %v252_v11 = vpop.f32.mrf.mxu1  ;;  %v3170_v12 = vpop.f32.mrf.mxu0 }
 0x20e   :  { %v906_v37 = vpack.c.bf16 %v252_v11, %v252_v11  ;;  %v910_v7 = vpack.c.bf16 %v3170_v12, %v3170_v12 }
 0x20f   :  { %v2501_v13 = vpop.f32.mrf.mxu1  ;;  %v2521_v14 = vpop.f32.mrf.mxu0 }
 0x215   :  { %v308_v15 = vpop.f32.mrf.mxu1  ;;  %v485_v17 = vpop.f32.mrf.mxu0 }
 0x216   :  { %v913_v18 = vpack.c.bf16 %v485_v17, %v485_v17  ;;  %v907_v53 = vpack.c.bf16 %v308_v15, %v308_v15 }
 0x217   :  { %v2510_v19 = vpop.f32.mrf.mxu1  ;;  %v2540_v20 = vpop.f32.mrf.mxu0 }
 0x218   :  { %v934_v21 = vsel %vm929_vm6, %v913_v18, 0 }
 0x219   :  { %v311_v22 = vpop.f32.mrf.mxu1  ;;  %v488_v23 = vpop.f32.mrf.mxu0  ;;  %2613 = vmatpush3.bf16.xpose.msra.mxu0 %v934_v21 }
 0x21a   :  { %2618 = vmatprep.subr.bf16.mxu0 %v2880_v6  ;;  %v914_v26 = vpack.c.bf16 %v488_v23, %v488_v23  ;;  %v908_v58 = vpack.c.bf16 %v311_v22, %v311_v22 }
 0x21b   :  { %v2511_v24 = vpop.f32.mrf.mxu1  ;;  %v2541_v25 = vpop.f32.mrf.mxu0 }
 0x21c   :  { %v980_v28 = vsel %vm929_vm6, %v914_v26, 0 }
 0x220   :  { %2615 = vmatmul.mubr.msk.bf16.vlgmr.msra.gmra.mxu0 %vm929_vm6, %v905_v27 }
 0x221   :  { %v3176_v31 = vpop.f32.mrf.mxu1  ;;  %v603_v32 = vpop.f32.mrf.mxu0  ;;  %2619 = vmatpush3.bf16.xpose.msra.mxu0 %v980_v28  ;;  %2620 = vmatprep.mubr.msk.bf16.mxu0 %vm2881_vm4, %v2880_v6 }
 0x222   :  { %2630 = vmatprep.subr.bf16.mxu0 %v2880_v6  ;;  %v917_v51 = vpack.c.bf16 %v603_v32, %v603_v32  ;;  %v911_v11 = vpack.c.bf16 %v3176_v31, %v3176_v31 }
 0x223   :  { %v2530_v33 = vpop.f32.mrf.mxu1  ;;  %v2560_v34 = vpop.f32.mrf.mxu0 }
 0x224   :  { %v1118_v54 = vsel %vm929_vm6, %v917_v51, 0 }
 0x225   :  { %v3181_v35 = vpop.f32.mrf.mxu1  ;;  %v606_v36 = vpop.f32.mrf.mxu0 }
 0x226   :  { %v918_v55 = vpack.c.bf16 %v606_v36, %v606_v36  ;;  %v912_v17 = vpack.c.bf16 %v3181_v35, %v3181_v35 }
 0x227   :  { %v2531_v38 = vpop.f32.mrf.mxu1  ;;  %v2561_v39 = vpop.f32.mrf.mxu0 }
 0x228   :  { %2621 = vmatmul.mubr.msk.bf16.vlgmr.msra.gmra.mxu0 %vm929_vm6, %v906_v37  ;;  %v1164_v61 = vsel %vm929_vm6, %v918_v55, 0 }
 0x229   :  { %2632 = vmatprep.mubr.msk.bf16.mxu0 %vm2881_vm4, %v2880_v6 }
 0x22d   :  { %v544_v40 = vpop.f32.mrf.mxu1  ;;  %v721_v41 = vpop.f32.mrf.mxu0 }
 0x22e   :  { %v915_v42 = vpack.c.bf16 %v544_v40, %v544_v40  ;;  %v921_v9 = vpack.c.bf16 %v721_v41, %v721_v41 }
 0x22f   :  { %v2550_v43 = vpop.f32.mrf.mxu1  ;;  %v2580_v44 = vpop.f32.mrf.mxu0 }
 0x230   :  { %v1026_v45 = vsel %vm929_vm6, %v915_v42, 0  ;;  %v1407_v13 = vsel %vm1405_vm7, %v921_v9, 0 }
 0x231   :  { %v547_v46 = vpop.f32.mrf.mxu1  ;;  %v724_v47 = vpop.f32.mrf.mxu0  ;;  %2625 = vmatpush3.bf16.xpose.msra.mxu1 %v1026_v45 }
 0x232   :  { %v916_v48 = vpack.c.bf16 %v547_v46, %v547_v46  ;;  %2636 = vmatprep.subr.bf16.mxu1 %v2880_v6  ;;  %v922_v14 = vpack.c.bf16 %v724_v47, %v724_v47 }
 0x233   :  { %v2551_v49 = vpop.f32.mrf.mxu1  ;;  %v2581_v50 = vpop.f32.mrf.mxu0 }
 0x234   :  { %v1072_v52 = vsel %vm929_vm6, %v916_v48, 0  ;;  %v1453_v19 = vsel %vm1405_vm7, %v922_v14, 0 }
 0x235   :  { %2631 = vmatpush3.bf16.xpose.msra.mxu0 %v1072_v52 }
 0x236   :  { %2642 = vmatprep.subr.bf16.mxu0 %v2880_v6 }
 0x238   :  { %2627 = vmatmul.mubr.msk.bf16.vlgmr.msra.gmra.mxu1 %vm929_vm6, %v907_v53 }
 0x239   :  { %v662_v56 = vpop.f32.mrf.mxu1  ;;  %v3192_v57 = vpop.f32.mrf.mxu0  ;;  %2637 = vmatpush3.bf16.xpose.msra.mxu1 %v1118_v54  ;;  %2638 = vmatprep.mubr.msk.bf16.mxu1 %vm2881_vm4, %v2880_v6 }
 0x23a   :  { %2648 = vmatprep.subr.bf16.mxu1 %v2880_v6  ;;  %v919_v62 = vpack.c.bf16 %v662_v56, %v662_v56 }
 0x23b   :  { %v2570_v59 = vpop.f32.mrf.mxu1  ;;  %v2600_v60 = vpop.f32.mrf.mxu0 }
 0x23c   :  { %2633 = vmatmul.mubr.msk.bf16.vlgmr.msra.gmra.mxu0 %vm929_vm6, %v908_v58  ;;  %v1210_v4 = vsel %vm929_vm6, %v919_v62, 0 }
 0x23d   :  { %v665_v63 = vpop.f32.mrf.mxu1  ;;  %v3199_v0 = vpop.f32.mrf.mxu0  ;;  %2643 = vmatpush3.bf16.xpose.msra.mxu0 %v1164_v61  ;;  %2644 = vmatprep.mubr.msk.bf16.mxu0 %vm2881_vm4, %v2880_v6 }
 0x23e   :  { %2654 = vmatprep.subr.bf16.mxu0 %v2880_v6  ;;  %v920_v5 = vpack.c.bf16 %v665_v63, %v665_v63 }
 0x23f   :  { %v2571_v2 = vpop.f32.mrf.mxu1  ;;  %v2601_v3 = vpop.f32.mrf.mxu0 }
 0x240   :  { %2639 = vmatmul.mubr.msk.bf16.vlgmr.msra.gmra.mxu1 %vm929_vm6, %v909_v1  ;;  %v1256_v8 = vsel %vm929_vm6, %v920_v5, 0 }
 0x241   :  { %2649 = vmatpush3.bf16.xpose.msra.mxu1 %v1210_v4  ;;  %2650 = vmatprep.mubr.msk.bf16.mxu1 %vm2881_vm4, %v2880_v6 }
 0x242   :  { %2660 = vmatprep.subr.bf16.mxu1 %v2880_v6 }
 0x244   :  { %2645 = vmatmul.mubr.msk.bf16.vlgmr.msra.gmra.mxu0 %vm929_vm6, %v910_v7 }
 0x245   :  { %v3215_v10 = vpop.f32.mrf.mxu1  ;;  %2655 = vmatpush3.bf16.xpose.msra.mxu0 %v1256_v8  ;;  %2656 = vmatprep.mubr.msk.bf16.mxu0 %vm2881_vm4, %v2880_v6 }
 0x246   :  { %2666 = vmatprep.subr.bf16.mxu0 %v2880_v6 }
 0x247   :  { %v2590_v12 = vpop.f32.mrf.mxu1 }
 0x248   :  { %2651 = vmatmul.mubr.msk.bf16.vlgmr.msra.gmra.mxu1 %vm929_vm6, %v911_v11 }
 0x249   :  { %v3224_v15 = vpop.f32.mrf.mxu1  ;;  %2661 = vmatpush3.bf16.msra.mxu1 %v1407_v13  ;;  %2662 = vmatprep.mubr.msk.bf16.mxu1 %vm2881_vm4, %v2880_v6 }
 0x24a   :  { %2672 = vmatprep.subr.bf16.mxu1 %v2880_v6 }
 0x24b   :  { %v2591_v18 = vpop.f32.mrf.mxu1 }
 0x24c   :  { %2657 = vmatmul.mubr.msk.bf16.vlgmr.msra.gmra.mxu0 %vm929_vm6, %v912_v17 }
 0x24d   :  { %2667 = vmatpush3.bf16.msra.mxu0 %v1453_v19  ;;  %2668 = vmatprep.mubr.msk.bf16.mxu0 %vm2881_vm4, %v2880_v6 }
 0x24e   :  { %2678 = vmatprep.subr.bf16.mxu0 %v2880_v6 }
 0x251   :  { %v3236_v20 = vpop.f32.mrf.mxu1 }
 0x253   :  { %v2610_v21 = vpop.f32.mrf.mxu1 }
 0x255   :  { %v3238_v22 = vpop.f32.mrf.mxu1 }
 0x257   :  { %v2611_v23 = vpop.f32.mrf.mxu1 }
 0x2e0   :  { %v970_v24 = vpop.f32.mrf.mxu0 }
 0x2e1   :  { %v1298_v25 = vmul.f32 0.35355338, %v970_v24 }
 0x2e2   :  { %v2616_v26 = vpop.f32.mrf.mxu0 }
 0x2e3   :  { %v1306_v27 = vsel %vm929_vm6, %v1298_v25, -inf }
 0x2e4   :  { %1307 = vmax.xlane.f32.xlu1 %v1306_v27  ;;  %v973_v28 = vpop.f32.mrf.mxu0 }
 0x2e6   :  { %v2617_v31 = vpop.f32.mrf.mxu0 }
 0x2e8   :  { %v1016_v32 = vpop.f32.mrf.mxu0 }
 0x2e9   :  { %v1299_v33 = vmul.f32 0.35355338, %v1016_v32 }
 0x2ea   :  { %v2622_v34 = vpop.f32.mrf.mxu0 }
 0x2eb   :  { %v1309_v35 = vsel %vm929_vm6, %v1299_v33, -inf }
 0x2ec   :  { %1310 = vmax.xlane.f32.xlu1 %v1309_v35  ;;  %v1019_v36 = vpop.f32.mrf.mxu0 }
 0x2ee   :  { %v2623_v37 = vpop.f32.mrf.mxu0 }
 0x2f8   :  { %v1062_v38 = vpop.f32.mrf.mxu1 }
 0x2f9   :  { %v1300_v39 = vmul.f32 0.35355338, %v1062_v38 }
 0x2fa   :  { %v2628_v40 = vpop.f32.mrf.mxu1 }
 0x2fb   :  { %v1312_v41 = vsel %vm929_vm6, %v1300_v39, -inf }
 0x2fc   :  { %v1108_v42 = vpop.f32.mrf.mxu0  ;;  %1313 = vmax.xlane.f32.xlu0 %v1312_v41  ;;  %v1065_v43 = vpop.f32.mrf.mxu1 }
 0x2fd   :  { %v1301_v44 = vmul.f32 0.35355338, %v1108_v42 }
 0x2fe   :  { %v2629_v45 = vpop.f32.mrf.mxu1  ;;  %v2634_v46 = vpop.f32.mrf.mxu0 }
 0x2ff   :  { %v1315_v47 = vsel %vm929_vm6, %v1301_v44, -inf }
 0x300   :  { %1316 = vmax.xlane.f32.xlu1 %v1315_v47  ;;  %v1111_v48 = vpop.f32.mrf.mxu0  ;;  %v1154_v49 = vpop.f32.mrf.mxu1 }
 0x301   :  { %v1302_v50 = vmul.f32 0.35355338, %v1154_v49 }
 0x302   :  { %v2635_v51 = vpop.f32.mrf.mxu0  ;;  %v2640_v52 = vpop.f32.mrf.mxu1 }
 0x303   :  { %v1318_v53 = vsel %vm929_vm6, %v1302_v50, -inf }
 0x304   :  { %v1200_v54 = vpop.f32.mrf.mxu0  ;;  %1319 = vmax.xlane.f32.xlu1 %v1318_v53  ;;  %v1157_v55 = vpop.f32.mrf.mxu1 }
 0x305   :  { %v1303_v56 = vmul.f32 0.35355338, %v1200_v54 }
 0x306   :  { %v2641_v58 = vpop.f32.mrf.mxu1  ;;  %v2646_v59 = vpop.f32.mrf.mxu0 }
 0x307   :  { %v1321_v60 = vsel %vm929_vm6, %v1303_v56, -inf }
 0x308   :  { %v1203_v61 = vpop.f32.mrf.mxu0  ;;  %1322 = vmax.xlane.f32.xlu1 %v1321_v60  ;;  %v1246_v62 = vpop.f32.mrf.mxu1 }
 0x309   :  { %v1304_v63 = vmul.f32 0.35355338, %v1246_v62 }
 0x30a   :  { %v2647_v1 = vpop.f32.mrf.mxu0  ;;  %v2652_v2 = vpop.f32.mrf.mxu1 }
 0x30b   :  { %v1324_v3 = vsel %vm929_vm6, %v1304_v63, -inf  ;;  %v923_v1 = vpack.c.bf16 %v3215_v10, %v3215_v10 }
 0x30c   :  { %v1292_v4 = vpop.f32.mrf.mxu0  ;;  %1325 = vmax.xlane.f32.xlu1 %v1324_v3  ;;  %v1249_v5 = vpop.f32.mrf.mxu1 }
 0x30d   :  { %v1305_v7 = vmul.f32 0.35355338, %v1292_v4  ;;  %v1499_v4 = vsel %vm1405_vm7, %v923_v1, 0 }
 0x30e   :  { %v2653_v9 = vpop.f32.mrf.mxu1  ;;  %v2658_v8 = vpop.f32.mrf.mxu0 }
 0x30f   :  { %v1327_v11 = vsel %vm929_vm6, %v1305_v7, -inf }
 0x310   :  { %v1295_v12 = vpop.f32.mrf.mxu0  ;;  %1328 = vmax.xlane.f32.xlu1 %v1327_v11 }
 0x312   :  { %v2659_v13 = vpop.f32.mrf.mxu0 }
 0x36d   :  { %v1308_v14 = vpop.xlane.xlu1 %1307 }
 0x36e   :  { %v1330_v17 = vsub.f32 %v1298_v25, %v1308_v14 }
 0x370   :  { %v1338_v18 = vmul.f32 1.442695, %v1330_v17  ;;  %v925_v17 = vpack.c.bf16 %v3192_v57, %v3192_v57 }
 0x372   :  { %2813 = vpow2.f32 %v1338_v18 }
 0x375   :  { %v1311_v19 = vpop.xlane.xlu1 %1310 }
 0x376   :  { %v1331_v21 = vsub.f32 %v1299_v33, %v1311_v19 }
 0x378   :  { %v1340_v23 = vmul.f32 1.442695, %v1331_v21 }
 0x37a   :  { %2815 = vpow2.f32 %v1340_v23 }
 0x37f   :  { %v2814_v24 = vpop.eup %2813 }
 0x380   :  { %v1354_v26 = vsel %vm929_vm6, %v2814_v24, 0.0 }
 0x381   :  { %1355 = vadd.xlane.f32.xlu1 %v1354_v26  ;;  %v926_v26 = vpack.c.bf16 %v3199_v0, %v3199_v0 }
 0x385   :  { %v1314_v27 = vpop.xlane.xlu0 %1313 }
 0x386   :  { %v1332_v28 = vsub.f32 %v1300_v39, %v1314_v27 }
 0x387   :  { %v2816_v31 = vpop.eup %2815 }
 0x388   :  { %v1342_v32 = vmul.f32 1.442695, %v1332_v28  ;;  %v1357_v34 = vsel %vm929_vm6, %v2816_v31, 0.0 }
 0x389   :  { %v1317_v35 = vpop.xlane.xlu1 %1316  ;;  %1358 = vadd.xlane.f32.xlu1 %v1357_v34  ;;  %v927_v34 = vpack.c.bf16 %v3236_v20, %v3236_v20 }
 0x38a   :  { %2817 = vpow2.f32 %v1342_v32  ;;  %v1333_v25 = vsub.f32 %v1301_v44, %v1317_v35  ;;  %v1637_v32 = vsel %vm1405_vm7, %v926_v26, 0 }
 0x38c   :  { %v1344_v36 = vmul.f32 1.442695, %v1333_v25 }
 0x38d   :  { %v1320_v37 = vpop.xlane.xlu1 %1319 }
 0x38e   :  { %2819 = vpow2.f32 %v1344_v36  ;;  %v1334_v33 = vsub.f32 %v1302_v50, %v1320_v37  ;;  %v1683_v36 = vsel %vm1405_vm7, %v927_v34, 0  ;;  %v928_v37 = vpack.c.bf16 %v3238_v22, %v3238_v22 }
 0x390   :  { %v1346_v38 = vmul.f32 1.442695, %v1334_v33 }
 0x391   :  { %v1323_v40 = vpop.xlane.xlu1 %1322 }
 0x392   :  { %2821 = vpow2.f32 %v1346_v38  ;;  %v1335_v41 = vsub.f32 %v1303_v56, %v1323_v40  ;;  %v1729_v40 = vsel %vm1405_vm7, %v928_v37, 0 }
 0x394   :  { %v1348_v42 = vmul.f32 1.442695, %v1335_v41 }
 0x395   :  { %v1326_v43 = vpop.xlane.xlu1 %1325 }
 0x396   :  { %2823 = vpow2.f32 %v1348_v42  ;;  %v1336_v39 = vsub.f32 %v1304_v63, %v1326_v43 }
 0x397   :  { %v2818_v45 = vpop.eup %2817 }
 0x398   :  { %v1350_v46 = vmul.f32 1.442695, %v1336_v39  ;;  %v1360_v47 = vsel %vm929_vm6, %v2818_v45, 0.0 }
 0x399   :  { %1361 = vadd.xlane.f32.xlu1 %v1360_v47  ;;  %v1329_v48 = vpop.xlane.xlu1 %1328  ;;  %v1772_v47 = vld [vmem:[%s3443_s3 + $0x54] sm:$0xf] }
 0x39a   :  { %2825 = vpow2.f32 %v1350_v46  ;;  %v1337_v44 = vsub.f32 %v1305_v7, %v1329_v48  ;;  %v924_v7 = vpack.c.bf16 %v3224_v15, %v3224_v15  ;;  %v1830_v48 = vsel %vm1405_vm7, %v1772_v47, 0 }
 0x39b   :  { %v2820_v49 = vpop.eup %2819 }
 0x39c   :  { %v1352_v51 = vmul.f32 1.442695, %v1337_v44  ;;  %v1363_v50 = vsel %vm929_vm6, %v2820_v49, 0.0  ;;  %v1545_v11 = vsel %vm1405_vm7, %v924_v7, 0 }
 0x39d   :  { %1364 = vadd.xlane.f32.xlu0 %v1363_v50 }
 0x39e   :  { %2827 = vpow2.f32 %v1352_v51 }
 0x39f   :  { %v3252_v52 = vpop.eup %2821 }
 0x3a0   :  { %v1366_v53 = vsel %vm929_vm6, %v3252_v52, 0.0 }
 0x3a1   :  { %1367 = vadd.xlane.f32.xlu1 %v1366_v53 }
 0x3a3   :  { %v3256_v54 = vpop.eup %2823 }
 0x3a4   :  { %v1369_v55 = vsel %vm929_vm6, %v3256_v54, 0.0 }
 0x3a5   :  { %1370 = vadd.xlane.f32.xlu0 %v1369_v55 }
 0x3a7   :  { %v3260_v56 = vpop.eup %2825 }
 0x3a8   :  { %v1372_v58 = vsel %vm929_vm6, %v3260_v56, 0.0 }
 0x3a9   :  { %1373 = vadd.xlane.f32.xlu1 %v1372_v58 }
 0x3ab   :  { %v3264_v59 = vpop.eup %2827 }
 0x3ac   :  { %v1375_v60 = vsel %vm929_vm6, %v3264_v59, 0.0 }
 0x3ad   :  { %1376 = vadd.xlane.f32.xlu0 %v1375_v60 }
 0x40a   :  { %v1356_v61 = vpop.xlane.xlu1 %1355 }
 0x40b   :  { %2829 = vrcp.f32 %v1356_v61 }
 0x412   :  { %v1359_v62 = vpop.xlane.xlu1 %1358 }
 0x413   :  { %2831 = vrcp.f32 %v1359_v62  ;;  %v1774_v62 = vld [vmem:[%s3443_s3 + $0x5c] sm:$0xf] }
 0x418   :  { %v2830_v63 = vpop.eup %2829 }
 0x419   :  { %v1379_v2 = vmul.f32 %v2830_v63, %v2814_v24  ;;  %v1591_v24 = vsel %vm1405_vm7, %v925_v17, 0 }
 0x41b   :  { %v1394_v3 = vpack.c.bf16 %v1379_v2, %v1379_v2 }
 0x41d   :  { %2663 = vmatmul.mubr.msk.bf16.vlgmr.msra.gmra.mxu1 %vm929_vm6, %v1394_v3  ;;  %v1924_v3 = vsel %vm1405_vm7, %v1774_v62, 0 }
 0x41e   :  { %2673 = vmatpush3.bf16.msra.mxu1 %v1499_v4  ;;  %2674 = vmatprep.mubr.msk.bf16.mxu1 %vm2881_vm4, %v2880_v6 }
 0x41f   :  { %2684 = vmatprep.subr.bf16.mxu1 %v2880_v6 }
 0x420   :  { %v2832_v5 = vpop.eup %2831 }
 0x421   :  { %v1381_v9 = vmul.f32 %v2832_v5, %v2816_v31 }
 0x422   :  { %v1362_v8 = vpop.xlane.xlu1 %1361 }
 0x423   :  { %2833 = vrcp.f32 %v1362_v8  ;;  %v1395_v10 = vpack.c.bf16 %v1381_v9, %v1381_v9 }
 0x425   :  { %2669 = vmatmul.mubr.msk.bf16.vlgmr.msra.gmra.mxu0 %vm929_vm6, %v1395_v10 }
 0x426   :  { %2679 = vmatpush3.bf16.msra.mxu0 %v1545_v11  ;;  %v1365_v12 = vpop.xlane.xlu0 %1364  ;;  %2680 = vmatprep.mubr.msk.bf16.mxu0 %vm2881_vm4, %v2880_v6 }
 0x427   :  { %2835 = vrcp.f32 %v1365_v12  ;;  %2690 = vmatprep.subr.bf16.mxu0 %v2880_v6 }
 0x42a   :  { %v1368_v13 = vpop.xlane.xlu1 %1367 }
 0x42b   :  { %2837 = vrcp.f32 %v1368_v13 }
 0x42e   :  { %v1371_v14 = vpop.xlane.xlu0 %1370 }
 0x42f   :  { %2839 = vrcp.f32 %v1371_v14 }
 0x430   :  { %v2834_v15 = vpop.eup %2833 }
 0x431   :  { %v1383_v18 = vmul.f32 %v2834_v15, %v2818_v45  ;;  %v1771_v45 = vld [vmem:[%s3443_s3 + $0x50] sm:$0xf] }
 0x432   :  { %v1374_v19 = vpop.xlane.xlu1 %1373  ;;  %v1783_v46 = vsel %vm1405_vm7, %v1771_v45, 0  ;;  %v3362_v45 = vld [vmem:[%s3444_s4] sm:$0xff] }
 0x433   :  { %2841 = vrcp.f32 %v1374_v19  ;;  %v1396_v21 = vpack.c.bf16 %v1383_v18, %v1383_v18 }
 0x434   :  { %v2836_v23 = vpop.eup %2835 }
 0x435   :  { %2675 = vmatmul.mubr.msk.bf16.vlgmr.msra.gmra.mxu1 %vm929_vm6, %v1396_v21  ;;  %v1385_v27 = vmul.f32 %v2836_v23, %v2820_v49 }
 0x436   :  { %2685 = vmatpush3.bf16.msra.mxu1 %v1591_v24  ;;  %v1377_v28 = vpop.xlane.xlu0 %1376  ;;  %2686 = vmatprep.mubr.msk.bf16.mxu1 %vm2881_vm4, %v2880_v6 }
 0x437   :  { %2843 = vrcp.f32 %v1377_v28  ;;  %v1397_v57 = vpack.c.bf16 %v1385_v27, %v1385_v27  ;;  %2696 = vmatprep.subr.bf16.mxu1 %v2880_v6 }
 0x438   :  { %v2838_v31 = vpop.eup %2837 }
 0x439   :  { %2681 = vmatmul.mubr.msk.bf16.vlgmr.msra.gmra.mxu0 %vm929_vm6, %v1397_v57  ;;  %v1387_v0 = vmul.f32 %v2838_v31, %v3252_v52  ;;  %v1773_v52 = vld [vmem:[%s3443_s3 + $0x58] sm:$0xf] }
 0x43a   :  { %2691 = vmatpush3.bf16.msra.mxu0 %v1637_v32  ;;  %2692 = vmatprep.mubr.msk.bf16.mxu0 %vm2881_vm4, %v2880_v6  ;;  %v1877_v55 = vsel %vm1405_vm7, %v1773_v52, 0 }
 0x43b   :  { %v1398_v35 = vpack.c.bf16 %v1387_v0, %v1387_v0  ;;  %2702 = vmatprep.subr.bf16.mxu0 %v2880_v6 }
 0x43c   :  { %v2840_v25 = vpop.eup %2839 }
 0x43d   :  { %2687 = vmatmul.mubr.msk.bf16.vlgmr.msra.gmra.mxu1 %vm929_vm6, %v1398_v35  ;;  %v1389_v20 = vmul.f32 %v2840_v25, %v3256_v54 }
 0x43e   :  { %2697 = vmatpush3.bf16.msra.mxu1 %v1683_v36  ;;  %2698 = vmatprep.mubr.msk.bf16.mxu1 %vm2881_vm4, %v2880_v6 }
 0x43f   :  { %v1399_v33 = vpack.c.bf16 %v1389_v20, %v1389_v20  ;;  %2708 = vmatprep.subr.bf16.mxu1 %v2880_v6 }
 0x440   :  { %v2842_v38 = vpop.eup %2841 }
 0x441   :  { %2693 = vmatmul.mubr.msk.bf16.vlgmr.msra.gmra.mxu0 %vm929_vm6, %v1399_v33  ;;  %v1391_v41 = vmul.f32 %v2842_v38, %v3260_v56  ;;  %v3353_v33 = vshrl.u32 %v24_v16, 7 }
 0x442   :  { %2703 = vmatpush3.bf16.msra.mxu0 %v1729_v40  ;;  %2704 = vmatprep.mubr.msk.bf16.mxu0 %vm2881_vm4, %v2880_v6 }
 0x443   :  { %v1400_v22 = vpack.c.bf16 %v1391_v41, %v1391_v41  ;;  %2714 = vmatprep.subr.bf16.mxu0 %v2880_v6 }
 0x444   :  { %v2844_v42 = vpop.eup %2843 }
 0x445   :  { %2699 = vmatmul.mubr.msk.bf16.vlgmr.msra.gmra.mxu1 %vm929_vm6, %v1400_v22  ;;  %v1393_v43 = vmul.f32 %v2844_v42, %v3264_v59  ;;  %v1984_v42 = vsub.s32 1, %v3353_v33 }
 0x446   :  { %2710 = vmatprep.mubr.msk.bf16.mxu1 %vm2881_vm4, %v2880_v6  ;;  %2709 = vmatpush3.bf16.msra.mxu1 %v1783_v46 }
 0x447   :  { %v1401_v39 = vpack.c.bf16 %v1393_v43, %v1393_v43  ;;  %2720 = vmatprep.subr.bf16.mxu1 %v2880_v6 }
 0x449   :  { %2705 = vmatmul.mubr.msk.bf16.vlgmr.msra.gmra.mxu0 %vm929_vm6, %v1401_v39 }
 0x44a   :  { %2716 = vmatprep.mubr.msk.bf16.mxu0 %vm2881_vm4, %v2880_v6  ;;  %2715 = vmatpush3.bf16.msra.mxu0 %v1830_v48 }
 0x44b   :  { %2726 = vmatprep.subr.bf16.mxu0 %v2880_v6 }
 0x4dd   :  { %v1443_v44 = vpop.f32.mrf.mxu1 }
 0x4df   :  { %v2664_v49 = vpop.f32.mrf.mxu1 }
 0x4e0   :  { %v1985_v49 = vrot.slane %v3362_v45, %v1984_v42  ;;  %v2809_v42 = vld [vmem:[%s3443_s3 + $0x28] sm:$0xff]  }
 0x4e1   :  { %v1446_v51 = vpop.f32.mrf.mxu1 }
 0x4e3   :  { %v2665_v50 = vpop.f32.mrf.mxu1 }
 0x4e5   :  { %v1489_v53 = vpop.f32.mrf.mxu0 }
 0x4e6   :  { %v1775_v54 = vpack.c.bf16 %v1489_v53, %v1443_v44 }
 0x4e7   :  { %v2670_v56 = vpop.f32.mrf.mxu0 }
 0x4e8   :  { %2711 = vmatmul.mubr.msk.bf16.vlgmr.msra.gmra.mxu1 %vm929_vm6, %v1775_v54 }
 0x4e9   :  { %v1492_v58 = vpop.f32.mrf.mxu0  ;;  %2721 = vmatpush3.bf16.msra.mxu1 %v1877_v55  ;;  %2722 = vmatprep.mubr.msk.bf16.mxu1 %vm2881_vm4, %v2880_v6 }
 0x4ea   :  { %2732 = vmatprep.subr.bf16.mxu1 %v2880_v6 }
 0x4eb   :  { %v2671_v59 = vpop.f32.mrf.mxu0 }
 0x4f5   :  { %v1535_v60 = vpop.f32.mrf.mxu1 }
 0x4f7   :  { %v2676_v61 = vpop.f32.mrf.mxu1 }
 0x4f9   :  { %v1538_v63 = vpop.f32.mrf.mxu1  ;;  %v1581_v1 = vpop.f32.mrf.mxu0 }
 0x4fa   :  { %v1776_v2 = vpack.c.bf16 %v1581_v1, %v1535_v60 }
 0x4fb   :  { %v2677_v4 = vpop.f32.mrf.mxu1  ;;  %v2682_v5 = vpop.f32.mrf.mxu0 }
 0x4fc   :  { %2717 = vmatmul.mubr.msk.bf16.vlgmr.msra.gmra.mxu0 %vm929_vm6, %v1776_v2 }
 0x4fd   :  { %v1584_v7 = vpop.f32.mrf.mxu0  ;;  %v1627_v9 = vpop.f32.mrf.mxu1  ;;  %2727 = vmatpush3.bf16.msra.mxu0 %v1924_v3  ;;  %2728 = vmatprep.mubr.msk.bf16.mxu0 %vm2881_vm4, %v2880_v6 }
 0x4fe   :  { %2740 = vmatprep.subr.bf16.mxu0 %v2880_v6 }
 0x4ff   :  { %v2683_v8 = vpop.f32.mrf.mxu0  ;;  %v2688_v10 = vpop.f32.mrf.mxu1 }
 0x501   :  { %v1630_v11 = vpop.f32.mrf.mxu1  ;;  %v1673_v12 = vpop.f32.mrf.mxu0 }
 0x502   :  { %v1777_v13 = vpack.c.bf16 %v1673_v12, %v1627_v9 }
 0x503   :  { %v2689_v14 = vpop.f32.mrf.mxu1  ;;  %v2694_v15 = vpop.f32.mrf.mxu0 }
 0x504   :  { %2723 = vmatmul.mubr.msk.bf16.vlgmr.msra.gmra.mxu1 %vm929_vm6, %v1777_v13  ;;  %v2804_v15 = vld [vmem:[%s3443_s3] sm:$0xff]  }
 0x505   :  { %v1676_v17 = vpop.f32.mrf.mxu0  ;;  %v1719_v18 = vpop.f32.mrf.mxu1  ;;  %2736 = vmatprep.mubr.msk.bf16.mxu1 %vm2881_vm4, %v2880_v6 }
 0x507   :  { %v2695_v19 = vpop.f32.mrf.mxu0  ;;  %v2700_v21 = vpop.f32.mrf.mxu1 }
 0x509   :  { %v1722_v23 = vpop.f32.mrf.mxu1  ;;  %v1765_v24 = vpop.f32.mrf.mxu0 }
 0x50a   :  { %v1778_v26 = vpack.c.bf16 %v1765_v24, %v1719_v18 }
 0x50b   :  { %v2701_v27 = vpop.f32.mrf.mxu1  ;;  %v2706_v28 = vpop.f32.mrf.mxu0 }
 0x50c   :  { %2729 = vmatmul.mubr.msk.bf16.vlgmr.msra.gmra.mxu0 %vm929_vm6, %v1778_v26  ;;  %v2019_v26 = vsub.s32 2, %v3353_v33 }
 0x50d   :  { %v1768_v57 = vpop.f32.mrf.mxu0  ;;  %2756 = vmatprep.mubr.msk.bf16.mxu0 %vm2881_vm4, %v2880_v6 }
 0x50e   :  { %v2020_v57 = vrot.slane %v3362_v45, %v2019_v26 }
 0x50f   :  { %v2707_v31 = vpop.f32.mrf.mxu0 }
 0x510   :  { %v2025_v31 = vsub.s32 3, %v3353_v33 }
 0x5a8   :  { %v1819_v32 = vpop.f32.mrf.mxu1 }
 0x5a9   :  { %v1968_v43 = vsel %vm1967_vm8, %v1819_v32, 0.0 }
 0x5aa   :  { %v2712_v34 = vpop.f32.mrf.mxu1 }
 0x5ac   :  { %v1822_v0 = vpop.f32.mrf.mxu1 }
 0x5ad   :  { %v1975_v51 = vsel %vm1967_vm8, %v1822_v0, 0.0 }
 0x5ae   :  { %v2713_v35 = vpop.f32.mrf.mxu1 }
 0x5af   :  { %v2026_v35 = vrot.slane %v3362_v45, %v2025_v31 }
 0x5bc   :  { %v1866_v25 = vpop.f32.mrf.mxu0 }
 0x5bd   :  { %v1969_v41 = vsel %vm1967_vm8, %v1866_v25, 0.0 }
 0x5be   :  { %v2718_v36 = vpop.f32.mrf.mxu0  ;;  %v1970_v46 = vadd.f32 %v1969_v41, %v1968_v43  ;;  %v2807_v41 = vld [vmem:[%s3443_s3 + $0x38] sm:$0xff]   ;;  %v2810_v43 = vld [vmem:[%s3443_s3 + $0x20] sm:$0xff]  }
 0x5c0   :  { %v1869_v37 = vpop.f32.mrf.mxu0 }
 0x5c1   :  { %v1976_v47 = vsel %vm1967_vm8, %v1869_v37, 0.0 }
 0x5c2   :  { %v2719_v20 = vpop.f32.mrf.mxu0  ;;  %v1977_v53 = vadd.f32 %v1976_v47, %v1975_v51 }
 0x5c4   :  { %v1913_v38 = vpop.f32.mrf.mxu1 }
 0x5c5   :  { %v1971_v39 = vsel %vm1967_vm8, %v1913_v38, 0.0  ;;  %v2805_v38 = vld [vmem:[%s3443_s3 + $0x48] sm:$0xff]  }
 0x5c6   :  { %v2724_v40 = vpop.f32.mrf.mxu1  ;;  %v1972_v48 = vadd.f32 %v1971_v39, %v1970_v46  ;;  %2741 = vmatpush3.bf16.msra.mxu0 %v2805_v38  ;;  %v2811_v39 = vld [vmem:[%s3443_s3 + $0x18] sm:$0xff]   ;;  %v2812_v46 = vld [vmem:[%s3443_s3 + $0x10] sm:$0xff]  }
 0x5c7   :  { %2742 = vmatprep.subr.bf16.mxu0 %v2880_v6  ;;  %v2806_v40 = vld [vmem:[%s3443_s3 + $0x40] sm:$0xff]  }
 0x5c8   :  { %v1916_v22 = vpop.f32.mrf.mxu1 }
 0x5c9   :  { %v1978_v50 = vsel %vm1967_vm8, %v1916_v22, 0.0  ;;  %v2808_v22 = vld [vmem:[%s3443_s3 + $0x30] sm:$0xff]  }
 0x5ca   :  { %v2725_v16 = vpop.f32.mrf.mxu1  ;;  %v1979_v56 = vadd.f32 %v1978_v50, %v1977_v53  ;;  %2743 = vmatpush3.bf16.msra.mxu0 %v2806_v40  ;;  %v2252_v40 = vsub.s32 5, %v3353_v33 }
 0x5cb   :  { %2744 = vmatprep.subr.bf16.mxu0 %v2880_v6  ;;  %v2052_v16 = vsub.s32 0, %v3353_v33 }
 0x5cc   :  { %v1960_v44 = vpop.f32.mrf.mxu0 }
 0x5cd   :  { %v1973_v52 = vsel %vm1967_vm8, %v1960_v44, 0.0  ;;  %v2053_v47 = vrot.slane %v3362_v45, %v2052_v16 }
 0x5ce   :  { %v1974_v54 = vadd.f32 %v1973_v52, %v1972_v48  ;;  %v2730_v55 = vpop.f32.mrf.mxu0  ;;  %2745 = vmatpush3.bf16.msra.mxu0 %v2807_v41  ;;  %v2258_v41 = vsub.s32 6, %v3353_v33 }
 0x5cf   :  { %2746 = vmatprep.subr.bf16.mxu0 %v2880_v6 }
 0x5d0   :  { %v1986_v58 = vadd.f32 %v1985_v49, %v1974_v54  ;;  %v1963_v59 = vpop.f32.mrf.mxu0 }
 0x5d1   :  { %v1980_v60 = vsel %vm1967_vm8, %v1963_v59, 0.0 }
 0x5d2   :  { %v1981_v61 = vadd.f32 %v1980_v60, %v1979_v56  ;;  %v2731_v62 = vpop.f32.mrf.mxu0  ;;  %v1988_v63 = vadd.f32 %v1986_v58, %v2990_v30  ;;  %2747 = vmatpush3.bf16.msra.mxu0 %v2808_v22  ;;  %v2253_v22 = vrot.slane %v3362_v45, %v2252_v40 }
 0x5d3   :  { %2748 = vmatprep.subr.bf16.mxu0 %v2880_v6 }
 0x5d4   :  { %v1987_v1 = vadd.f32 %v1985_v49, %v1981_v61  ;;  %v1990_v2 = vsel %vm1967_vm8, %v1988_v63, 0.0 }
 0x5d5   :  { %1991 = vadd.xlane.f32.xlu1 %v1990_v2 }
 0x5d6   :  { %v1989_v3 = vadd.f32 %v2988_v29, %v1987_v1  ;;  %v2803_v29 = vld [vmem:[%s3443_s3 + $0x8] sm:$0xff]   ;;  %2749 = vmatpush3.bf16.msra.mxu0 %v2809_v42  ;;  %s2882_s3 = smov [#allocation2]  }
 0x5d7   :  { %2733 = vmatpush3.bf16.msra.mxu1 %v2803_v29  ;;  %2750 = vmatprep.subr.bf16.mxu0 %v2880_v6  ;;  %s2269_s29 = sshll.u32 %s2882_s3, 4  ;;  %s2270_s29 = int_to_ptr.vmem [resolvable:$true] %s2269_s29 }
 0x5d8   :  { %v1993_v4 = vsel %vm1967_vm8, %v1989_v3, 0.0  ;;  %2734 = vmatprep.subr.bf16.mxu1 %v2880_v6  ;;  %s2857_s30 = scalar_lea.vmem %s2270_s29, 256  ;;  %p2862_p1 = scmp.lt.s32.totalorder %s2270_s29, %s2270_s29 }
 0x5d9   :  { %1994 = vadd.xlane.f32.xlu0 %v1993_v4  ;;  %p2858_p0 = scmp.ne.s32.totalorder %s2270_s29, %s2857_s30  ;;  %p2863_p2 = scmp.lt.s32.totalorder %s2857_s30, %s2857_s30 }
 0x5da   :  { %2751 = vmatpush3.bf16.msra.mxu0 %v2810_v43 }
 0x5db   :  { %2735 = vmatpush3.bf16.msra.mxu1 %v2804_v15  ;;  %2752 = vmatprep.subr.bf16.mxu0 %v2880_v6  ;;  %p2864_p3 = por %p2863_p2, %p2862_p1 }
 0x5dd   :  { %p2865_p4 = pnand %p2864_p3, %p2858_p0 }
 0x5de   :  { %2753 = vmatpush3.bf16.msra.mxu0 %v2811_v39  ;;  %v2259_v39 = vrot.slane %v3362_v45, %v2258_v41 }
 0x5df   :  { %2754 = vmatprep.subr.bf16.mxu0 %v2880_v6 }
 0x5e2   :  { %2755 = vmatpush3.bf16.msra.mxu0 %v2812_v46 }
 0x65e   :  { %v1992_v5 = vpop.xlane.xlu1 %1991 }
 0x65f   :  { %v1997_v7 = vmul.f32 0.03125, %v1992_v5 }
 0x661   :  { %v1999_v9 = vsub.f32 %v1988_v63, %v1997_v7 }
 0x662   :  { %v1995_v8 = vpop.xlane.xlu0 %1994 }
 0x663   :  { %v1998_v10 = vmul.f32 0.03125, %v1995_v8  ;;  %v2001_v11 = vmul.f32 %v1999_v9, %v1999_v9 }
 0x665   :  { %v2000_v12 = vsub.f32 %v1989_v3, %v1998_v10  ;;  %v2003_v13 = vsel %vm1967_vm8, %v2001_v11, 0.0  ;;  %v2131_v10 = vsub.s32 4, %v3353_v33 }
 0x666   :  { %2004 = vadd.xlane.f32.xlu1 %v2003_v13 }
 0x667   :  { %v2002_v30 = vmul.f32 %v2000_v12, %v2000_v12  ;;  %v2132_v11 = vrot.slane %v3362_v45, %v2131_v10 }
 0x669   :  { %v2006_v14 = vsel %vm1967_vm8, %v2002_v30, 0.0 }
 0x66a   :  { %2007 = vadd.xlane.f32.xlu0 %v2006_v14 }
 0x6ef   :  { %v2005_v17 = vpop.xlane.xlu1 %2004 }
 0x6f0   :  { %v2009_v18 = vmul.f32 0.03125, %v2005_v17 }
 0x6f2   :  { %v2011_v19 = vadd.f32 1e-05, %v2009_v18 }
 0x6f3   :  { %v2008_v21 = vpop.xlane.xlu0 %2007 }
 0x6f4   :  { %2845 = vrsqrt.f32 %v2011_v19  ;;  %v2010_v23 = vmul.f32 0.03125, %v2008_v21 }
 0x6f6   :  { %v2012_v24 = vadd.f32 1e-05, %v2010_v23 }
 0x6f8   :  { %2847 = vrsqrt.f32 %v2012_v24 }
 0x701   :  { %v2846_v27 = vpop.eup %2845 }
 0x702   :  { %v2015_v28 = vmul.f32 %v2846_v27, %v1999_v9 }
 0x704   :  { %v2021_v0 = vmul.f32 %v2020_v57, %v2015_v28 }
 0x705   :  { %v2848_v32 = vpop.eup %2847 }
 0x706   :  { %v2016_v34 = vmul.f32 %v2848_v32, %v2000_v12  ;;  %v2027_v36 = vadd.f32 %v2026_v35, %v2021_v0 }
 0x708   :  { %v2022_v25 = vmul.f32 %v2020_v57, %v2016_v34 }
 0x70a   :  { %v3387_v37 = vadd.f32 %v2026_v35, %v2022_v25 }
 0x70c   :  { %v2049_v20 = vpack.c.bf16 %v3387_v37, %v2027_v36 }
 0x70e   :  { %2737 = vmatmul.mubr.msk.bf16.vlgmr.msra.gmra.mxu1 %vm1967_vm8, %v2049_v20 }
 0x7ce   :  { %v2103_v48 = vpop.f32.mrf.mxu1 }
 0x7cf   :  { %v2104_v44 = vadd.f32 %v2103_v48, %v2053_v47 }
 0x7d0   :  { %v2738_v49 = vpop.f32.mrf.mxu1 }
 0x7d1   :  { %v2110_v51 = vmul.f32 %v2104_v44, %v2104_v44 }
 0x7d2   :  { %v2106_v50 = vpop.f32.mrf.mxu1 }
 0x7d3   :  { %v2112_v52 = vmul.f32 %v2110_v51, %v2104_v44  ;;  %v2107_v53 = vadd.f32 %v2106_v50, %v2053_v47 }
 0x7d4   :  { %v2739_v54 = vpop.f32.mrf.mxu1 }
 0x7d5   :  { %v2114_v55 = vmul.f32 0.044715, %v2112_v52  ;;  %v2111_v56 = vmul.f32 %v2107_v53, %v2107_v53 }
 0x7d7   :  { %v2116_v6 = vadd.f32 %v2114_v55, %v2104_v44  ;;  %v2113_v58 = vmul.f32 %v2111_v56, %v2107_v53 }
 0x7d9   :  { %v2118_v59 = vmul.f32 0.7978846, %v2116_v6  ;;  %v2115_v60 = vmul.f32 0.044715, %v2113_v58 }
 0x7db   :  { %2849 = vtanh.f32 %v2118_v59  ;;  %v2117_v61 = vadd.f32 %v2115_v60, %v2107_v53 }
 0x7dd   :  { %v2119_v62 = vmul.f32 0.7978846, %v2117_v61 }
 0x7df   :  { %2851 = vtanh.f32 %v2119_v62 }
 0x7e8   :  { %v2850_v63 = vpop.eup %2849 }
 0x7e9   :  { %v2122_v1 = vadd.f32 1.0, %v2850_v63 }
 0x7eb   :  { %v2124_v3 = vmul.f32 0.5, %v2122_v1 }
 0x7ec   :  { %v2852_v2 = vpop.eup %2851 }
 0x7ed   :  { %v2123_v4 = vadd.f32 1.0, %v2852_v2  ;;  %v2126_v7 = vmul.f32 %v2124_v3, %v2104_v44 }
 0x7ef   :  { %v2125_v5 = vmul.f32 0.5, %v2123_v4 }
 0x7f1   :  { %v2127_v9 = vmul.f32 %v2125_v5, %v2107_v53 }
 0x7f3   :  { %v2128_v8 = vpack.c.bf16 %v2127_v9, %v2126_v7 }
 0x7f5   :  { %2757 = vmatmul.mubr.bf16.vlgmr.msra.gmra.mxu0 %v2128_v8 }
 0x8b5   :  { %v2215_v12 = vpop.f32.mrf.mxu0 }
 0x8b6   :  { %v2216_v13 = vadd.f32 %v2215_v12, %v2132_v11 }
 0x8b7   :  { %v2758_v30 = vpop.f32.mrf.mxu0 }
 0x8b8   :  { %v2222_v14 = vadd.f32 %v2216_v13, %v2027_v36 }
 0x8b9   :  { %v2218_v29 = vpop.f32.mrf.mxu0 }
 0x8ba   :  { %v2219_v15 = vadd.f32 %v2218_v29, %v2132_v11  ;;  %v2224_v17 = vsel %vm1967_vm8, %v2222_v14, 0.0 }
 0x8bb   :  { %2225 = vadd.xlane.f32.xlu1 %v2224_v17  ;;  %v2759_v18 = vpop.f32.mrf.mxu0 }
 0x8bc   :  { %v2223_v19 = vadd.f32 %v2219_v15, %v3387_v37 }
 0x8be   :  { %v2227_v21 = vsel %vm1967_vm8, %v2223_v19, 0.0 }
 0x8bf   :  { %2228 = vadd.xlane.f32.xlu0 %v2227_v21 }
 0x944   :  { %v2226_v23 = vpop.xlane.xlu1 %2225 }
 0x945   :  { %v2230_v24 = vmul.f32 0.03125, %v2226_v23 }
 0x947   :  { %v2232_v26 = vsub.f32 %v2222_v14, %v2230_v24 }
 0x948   :  { %v2229_v27 = vpop.xlane.xlu0 %2228 }
 0x949   :  { %v2231_v28 = vmul.f32 0.03125, %v2229_v27  ;;  %v2234_v57 = vmul.f32 %v2232_v26, %v2232_v26 }
 0x94b   :  { %v2233_v31 = vsub.f32 %v2223_v19, %v2231_v28  ;;  %v2236_v32 = vsel %vm1967_vm8, %v2234_v57, 0.0 }
 0x94c   :  { %2237 = vadd.xlane.f32.xlu1 %v2236_v32 }
 0x94d   :  { %v2235_v34 = vmul.f32 %v2233_v31, %v2233_v31 }
 0x94f   :  { %v2239_v0 = vsel %vm1967_vm8, %v2235_v34, 0.0 }
 0x950   :  { %2240 = vadd.xlane.f32.xlu0 %v2239_v0 }
 0x9d5   :  { %v2238_v35 = vpop.xlane.xlu1 %2237 }
 0x9d6   :  { %v2242_v25 = vmul.f32 0.03125, %v2238_v35 }
 0x9d8   :  { %v2244_v36 = vadd.f32 1e-05, %v2242_v25 }
 0x9d9   :  { %v2241_v37 = vpop.xlane.xlu0 %2240 }
 0x9da   :  { %2853 = vrsqrt.f32 %v2244_v36  ;;  %v2243_v20 = vmul.f32 0.03125, %v2241_v37 }
 0x9dc   :  { %v2245_v38 = vadd.f32 1e-05, %v2243_v20 }
 0x9de   :  { %2855 = vrsqrt.f32 %v2245_v38 }
 0x9e7   :  { %v2854_v42 = vpop.eup %2853 }
 0x9e8   :  { %v2248_v43 = vmul.f32 %v2854_v42, %v2232_v26 }
 0x9ea   :  { %v2254_v46 = vmul.f32 %v2253_v22, %v2248_v43 }
 0x9eb   :  { %v2856_v16 = vpop.eup %2855 }
 0x9ec   :  { %v2249_v47 = vmul.f32 %v2856_v16, %v2233_v31  ;;  %v2260_v48 = vadd.f32 %v2259_v39, %v2254_v46 }
 0x9ee   :  { %v2255_v44 = vmul.f32 %v2253_v22, %v2249_v47  ;;  %2262 = vst.msk [vmem:[#allocation2] sm:$0xff] %vm1967_vm8, %v2260_v48 }
 0x9f0   :  { %v2261_v49 = vadd.f32 %v2259_v39, %v2255_v44 }
 0x9f2   :  { %2263 = vst.msk [vmem:[#allocation2 + $0x8] sm:$0xff] %vm1967_vm8, %v2261_v49 }
 0x9f3   :  { %2868 = shalt.err (!%p2865_p4)
}
 0x9f4   :  { %s2883_s6 = smov 128   ;;  %s2884_s7 = smov 8  }
 0x9f5   :  { %2275 = dma.vmem_to_hbm [thread:$0]  %s2270_s29, 256, %s3445_s5, [#allocation3], %s2883_s6, %s2883_s6, %s2884_s7  }
 0x9f6   :  { %2877 = dma.done.wait [#allocation3], 256  }
 0x9f7   :  { %2878 = vsyncadd [#allocation3], 4294967040 }
 0x9f8   :  { %2279 = vsyncpa [#allocation3], 1 }

</bundles_post_ra>
